<compile_context>
chip_gen: v7x
topology: tpu7x:2x2x1
jax: 0.10.0
libtpu: 0.0.40
codegen_flags: <defaults>
</compile_context>

<pallas_src>
import functools

import jax
import jax.numpy as jnp
from jax.experimental import pallas as pl
from jax.experimental.pallas import tpu as pltpu

S_DIM = 4        # CartPole-v1 observation dim
A_DIM = 2        # CartPole-v1 action dim
HIDDEN = 128
S_PAD = 8        # fc1 contraction dim padded to a sublane multiple
HEAD_PAD = 128   # fused actor+critic head padded to a full lane width


def _round_up(n, m):
    return ((n + m - 1) // m) * m


def actor_critic_kernel(x_ref, w1_ref, b1_ref, w2_ref, b2_ref,
                        wh_ref, bh_ref, out_ref):
    cdt = w1_ref.dtype                         # matmul-input dtype (bf16)

    # fc1 + ReLU  (K padded to 8; bias/ReLU in f32)
    x = x_ref[...].astype(cdt)                 # [tile_b, S_PAD]
    h1 = jnp.dot(x, w1_ref[...], preferred_element_type=jnp.float32) + b1_ref[...]
    h1 = jnp.maximum(h1, 0.0)

    # fc2 + ReLU
    h2 = jnp.dot(h1.astype(cdt), w2_ref[...],
                 preferred_element_type=jnp.float32) + b2_ref[...]
    h2 = jnp.maximum(h2, 0.0)

    # fused actor+critic head: one lane-padded [HIDDEN, HEAD_PAD] matmul.
    head = jnp.dot(h2.astype(cdt), wh_ref[...],
                   preferred_element_type=jnp.float32) + bh_ref[...]

    # masked softmax over the first A_DIM lanes (lane-dense, no narrow slices)
    lane = jax.lax.broadcasted_iota(jnp.int32, head.shape, 1)
    is_logit = lane < A_DIM
    masked = jnp.where(is_logit, head, jnp.float32(-1e30))
    m = jnp.max(masked, axis=-1, keepdims=True)
    e = jnp.where(is_logit, jnp.exp(masked - m), 0.0)
    denom = jnp.sum(e, axis=-1, keepdims=True)
    probs = e * pl.reciprocal(denom, approx=True)

    # single lane-dense output slab: lanes [0, A_DIM) = probs, lane A_DIM = value
    out_ref[...] = jnp.where(lane == A_DIM, head, probs)


def prepare_params(params, weights_dtype=jnp.bfloat16):
    """Pad fc1 to K=8, fuse actor+critic into one lane-padded head, cast weights."""
    w1, b1, w2, b2, wa, ba, wc, bc = params
    w1p = jnp.zeros((S_PAD, HIDDEN), jnp.float32).at[:S_DIM].set(w1)
    wh = jnp.zeros((HIDDEN, HEAD_PAD), jnp.float32)
    wh = wh.at[:, :A_DIM].set(wa).at[:, A_DIM:A_DIM + 1].set(wc)
    bh = jnp.zeros((1, HEAD_PAD), jnp.float32)
    bh = bh.at[:, :A_DIM].set(ba).at[:, A_DIM:A_DIM + 1].set(bc)
    return (w1p.astype(weights_dtype), b1,
            w2.astype(weights_dtype), b2,
            wh.astype(weights_dtype), bh)


@functools.partial(jax.jit, static_argnames=("tile_b",))
def actor_critic_forward(x, prepared, tile_b=256):
    """x: [B, S_DIM] f32.  Returns (probs [B, A_DIM] f32, value [B, 1] f32)."""
    B = x.shape[0]
    w1, b1, w2, b2, wh, bh = prepared

    tile_b = min(tile_b, _round_up(B, 8))       # never over-tile tiny batches
    Bp = _round_up(B, tile_b)

    # host-side layout plumbing: pad batch to tile multiple and K: 4 -> 8
    xp = jnp.zeros((Bp, S_PAD), jnp.float32).at[:B, :S_DIM].set(
        x.astype(jnp.float32))

    out = pl.pallas_call(
        actor_critic_kernel,
        grid=(Bp // tile_b,),
        out_shape=jax.ShapeDtypeStruct((Bp, HEAD_PAD), jnp.float32),
        in_specs=[
            pl.BlockSpec((tile_b, S_PAD), lambda i: (i, 0)),      # x tile
            pl.BlockSpec((S_PAD, HIDDEN), lambda i: (0, 0)),      # w1 (resident)
            pl.BlockSpec((1, HIDDEN), lambda i: (0, 0)),          # b1
            pl.BlockSpec((HIDDEN, HIDDEN), lambda i: (0, 0)),     # w2
            pl.BlockSpec((1, HIDDEN), lambda i: (0, 0)),          # b2
            pl.BlockSpec((HIDDEN, HEAD_PAD), lambda i: (0, 0)),   # fused head w
            pl.BlockSpec((1, HEAD_PAD), lambda i: (0, 0)),        # fused head b
        ],
        out_specs=pl.BlockSpec((tile_b, HEAD_PAD), lambda i: (i, 0)),
        compiler_params=pltpu.CompilerParams(
            dimension_semantics=("parallel",)),                   # megacore on v7x
    )(xp, w1, b1, w2, b2, wh, bh)

    probs = out[:B, :A_DIM]
    value = out[:B, A_DIM:A_DIM + 1]
    return probs, value


def init_params(key):
    """PyTorch nn.Linear default init (U(-1/sqrt(fan_in), 1/sqrt(fan_in)))."""
    def linear(key, fan_in, fan_out):
        kw, kb = jax.random.split(key)
        bound = 1.0 / jnp.sqrt(jnp.float32(fan_in))
        w = jax.random.uniform(kw, (fan_in, fan_out), jnp.float32, -bound, bound)
        b = jax.random.uniform(kb, (1, fan_out), jnp.float32, -bound, bound)
        return w, b

    k1, k2, k3, k4 = jax.random.split(key, 4)
    w1, b1 = linear(k1, S_DIM, HIDDEN)
    w2, b2 = linear(k2, HIDDEN, HIDDEN)
    wa, ba = linear(k3, HIDDEN, A_DIM)
    wc, bc = linear(k4, HIDDEN, 1)
    # TODO(synk): self.std (nn.Parameter ones(1, A_DIM)) is unused in forward; omitted.
    # TODO(synk): torch.distributions.Categorical has no Pallas equivalent; the
    #             kernel returns the softmax probability parameters instead.
    return (w1, b1, w2, b2, wa, ba, wc, bc)


def reference_forward(x, params):
    w1, b1, w2, b2, wa, ba, wc, bc = params
    h1 = jax.nn.relu(x @ w1 + b1)
    h2 = jax.nn.relu(h1 @ w2 + b2)
    probs = jax.nn.softmax(h2 @ wa + ba, axis=-1)
    value = h2 @ wc + bc
    return probs, value


if __name__ == "__main__":
    key = jax.random.PRNGKey(0)
    kp, kx, kx2 = jax.random.split(key, 3)
    params = init_params(kp)
    prepared = prepare_params(params, weights_dtype=jnp.bfloat16)

    # B=384 with tile_b=256 exercises the batch grid (2 steps) and batch padding.
    B = 384
    x = jax.random.normal(kx, (B, S_DIM), jnp.float32)

    probs, value = actor_critic_forward(x, prepared, tile_b=256)
    probs = jax.block_until_ready(probs)
    value = jax.block_until_ready(value)

    ref_probs, ref_value = reference_forward(x, params)
    assert probs.shape == (B, A_DIM) and value.shape == (B, 1)
    # bf16 matmul inputs -> loosened tolerance vs f32 reference
    assert jnp.allclose(probs, ref_probs, atol=3e-2, rtol=3e-2)
    assert jnp.allclose(value, ref_value, atol=3e-2, rtol=3e-2)
    assert jnp.allclose(jnp.sum(probs, axis=-1), 1.0, atol=2e-3)

    # tiny-batch / non-multiple-of-8 path
    x2 = jax.random.normal(kx2, (5, S_DIM), jnp.float32)
    p2, v2 = actor_critic_forward(x2, prepared, tile_b=256)
    p2 = jax.block_until_ready(p2)
    rp2, rv2 = reference_forward(x2, params)
    assert p2.shape == (5, A_DIM) and v2.shape == (5, 1)
    assert jnp.allclose(p2, rp2, atol=3e-2, rtol=3e-2)
    assert jnp.allclose(v2, rv2, atol=3e-2, rtol=3e-2)

    print("KERNEL_OK")
</pallas_src>

<mosaic_0001>
module attributes {stable_mosaic.version = 11 : i64} {
  func.func @actor_critic_kernel(%arg0: i32, %arg1: memref<256x8xf32, #tpu.memory_space<vmem>>, %arg2: memref<8x128xbf16, #tpu.memory_space<vmem>>, %arg3: memref<1x128xf32, #tpu.memory_space<vmem>>, %arg4: memref<128x128xbf16, #tpu.memory_space<vmem>>, %arg5: memref<1x128xf32, #tpu.memory_space<vmem>>, %arg6: memref<128x128xbf16, #tpu.memory_space<vmem>>, %arg7: memref<1x128xf32, #tpu.memory_space<vmem>>, %arg8: memref<256x128xf32, #tpu.memory_space<vmem>>) attributes {dimension_semantics = [#tpu.dimension_semantics<parallel>], iteration_bounds = array<i64: 2>, scalar_prefetch = 0 : i64, scratch_operands = 0 : i64, tpu.core_type = #tpu.core_type<tc>, window_params = [{transform_indices = @transform_0, window_bounds = array<i64: 256, 8>}, {pipeline_mode = #tpu.pipeline_mode<synchronous>, transform_indices = @transform_1, window_bounds = array<i64: 8, 128>}, {pipeline_mode = #tpu.pipeline_mode<synchronous>, transform_indices = @transform_2, window_bounds = array<i64: 1, 128>}, {pipeline_mode = #tpu.pipeline_mode<synchronous>, transform_indices = @transform_3, window_bounds = array<i64: 128, 128>}, {pipeline_mode = #tpu.pipeline_mode<synchronous>, transform_indices = @transform_4, window_bounds = array<i64: 1, 128>}, {pipeline_mode = #tpu.pipeline_mode<synchronous>, transform_indices = @transform_5, window_bounds = array<i64: 128, 128>}, {pipeline_mode = #tpu.pipeline_mode<synchronous>, transform_indices = @transform_6, window_bounds = array<i64: 1, 128>}, {transform_indices = @transform_7, window_bounds = array<i64: 256, 128>}]} {
    %c0 = arith.constant 0 : index
    %c0_0 = arith.constant 0 : index
    %0 = vector.load %arg1[%c0, %c0_0] : memref<256x8xf32, #tpu.memory_space<vmem>>, vector<256x8xf32>
    %1 = arith.truncf %0 : vector<256x8xf32> to vector<256x8xbf16>
    %c0_1 = arith.constant 0 : index
    %c0_2 = arith.constant 0 : index
    %2 = vector.load %arg2[%c0_1, %c0_2] : memref<8x128xbf16, #tpu.memory_space<vmem>>, vector<8x128xbf16>
    %cst = arith.constant dense<0.000000e+00> : vector<256x128xf32>
    %3 = tpu.matmul %1, %2, %cst {dimension_numbers = #tpu.dot_dimension_numbers<[1], [0], [0], [1], [0, 0, 1, 1], [], []>} : vector<256x8xbf16>, vector<8x128xbf16>, vector<256x128xf32> -> vector<256x128xf32>
    %c0_3 = arith.constant 0 : index
    %c0_4 = arith.constant 0 : index
    %4 = vector.load %arg3[%c0_3, %c0_4] : memref<1x128xf32, #tpu.memory_space<vmem>>, vector<1x128xf32>
    %5 = vector.broadcast %4 : vector<1x128xf32> to vector<256x128xf32>
    %6 = arith.addf %3, %5 : vector<256x128xf32>
    %cst_5 = arith.constant 0.000000e+00 : f32
    %7 = vector.broadcast %cst_5 : f32 to vector<256x128xf32>
    %8 = arith.maximumf %6, %7 : vector<256x128xf32>
    %9 = arith.truncf %8 : vector<256x128xf32> to vector<256x128xbf16>
    %c0_6 = arith.constant 0 : index
    %c0_7 = arith.constant 0 : index
    %10 = vector.load %arg4[%c0_6, %c0_7] : memref<128x128xbf16, #tpu.memory_space<vmem>>, vector<128x128xbf16>
    %cst_8 = arith.constant dense<0.000000e+00> : vector<256x128xf32>
    %11 = tpu.matmul %9, %10, %cst_8 {dimension_numbers = #tpu.dot_dimension_numbers<[1], [0], [0], [1], [0, 0, 1, 1], [], []>} : vector<256x128xbf16>, vector<128x128xbf16>, vector<256x128xf32> -> vector<256x128xf32>
    %c0_9 = arith.constant 0 : index
    %c0_10 = arith.constant 0 : index
    %12 = vector.load %arg5[%c0_9, %c0_10] : memref<1x128xf32, #tpu.memory_space<vmem>>, vector<1x128xf32>
    %13 = vector.broadcast %12 : vector<1x128xf32> to vector<256x128xf32>
    %14 = arith.addf %11, %13 : vector<256x128xf32>
    %cst_11 = arith.constant 0.000000e+00 : f32
    %15 = vector.broadcast %cst_11 : f32 to vector<256x128xf32>
    %16 = arith.maximumf %14, %15 : vector<256x128xf32>
    %17 = arith.truncf %16 : vector<256x128xf32> to vector<256x128xbf16>
    %c0_12 = arith.constant 0 : index
    %c0_13 = arith.constant 0 : index
    %18 = vector.load %arg6[%c0_12, %c0_13] : memref<128x128xbf16, #tpu.memory_space<vmem>>, vector<128x128xbf16>
    %cst_14 = arith.constant dense<0.000000e+00> : vector<256x128xf32>
    %19 = tpu.matmul %17, %18, %cst_14 {dimension_numbers = #tpu.dot_dimension_numbers<[1], [0], [0], [1], [0, 0, 1, 1], [], []>} : vector<256x128xbf16>, vector<128x128xbf16>, vector<256x128xf32> -> vector<256x128xf32>
    %c0_15 = arith.constant 0 : index
    %c0_16 = arith.constant 0 : index
    %20 = vector.load %arg7[%c0_15, %c0_16] : memref<1x128xf32, #tpu.memory_space<vmem>>, vector<1x128xf32>
    %21 = vector.broadcast %20 : vector<1x128xf32> to vector<256x128xf32>
    %22 = arith.addf %19, %21 : vector<256x128xf32>
    %23 = tpu.iota {dimensions = array<i32: 1>} : vector<256x128xi32>
    %c2_i32 = arith.constant 2 : i32
    %24 = vector.broadcast %c2_i32 : i32 to vector<256x128xi32>
    %25 = arith.cmpi slt, %23, %24 : vector<256x128xi32>
    %cst_17 = arith.constant -1.000000e+30 : f32
    %26 = vector.broadcast %cst_17 : f32 to vector<256x128xf32>
    %27 = arith.select %25, %22, %26 : vector<256x128xi1>, vector<256x128xf32>
    %cst_18 = arith.constant dense<0xFF800000> : vector<256xf32>
    %28 = vector.multi_reduction <maximumf>, %27, %cst_18 [1] : vector<256x128xf32> to vector<256xf32>
    %29 = vector.shape_cast %28 : vector<256xf32> to vector<256x1xf32>
    %30 = vector.broadcast %29 : vector<256x1xf32> to vector<256x128xf32>
    %31 = arith.subf %27, %30 : vector<256x128xf32>
    %32 = math.exp %31 : vector<256x128xf32>
    %cst_19 = arith.constant 0.000000e+00 : f32
    %33 = vector.broadcast %cst_19 : f32 to vector<256x128xf32>
    %34 = arith.select %25, %32, %33 : vector<256x128xi1>, vector<256x128xf32>
    %cst_20 = arith.constant dense<0.000000e+00> : vector<256xf32>
    %35 = vector.multi_reduction <add>, %34, %cst_20 [1] : vector<256x128xf32> to vector<256xf32>
    %36 = vector.shape_cast %35 : vector<256xf32> to vector<256x1xf32>
    %37 = tpu.reciprocal %36 {approx = true} : vector<256x1xf32> -> vector<256x1xf32>
    %38 = vector.broadcast %37 : vector<256x1xf32> to vector<256x128xf32>
    %39 = arith.mulf %34, %38 : vector<256x128xf32>
    %c2_i32_21 = arith.constant 2 : i32
    %40 = vector.broadcast %c2_i32_21 : i32 to vector<256x128xi32>
    %41 = arith.cmpi eq, %23, %40 : vector<256x128xi32>
    %42 = arith.select %41, %22, %39 : vector<256x128xi1>, vector<256x128xf32>
    %c0_22 = arith.constant 0 : index
    %c0_23 = arith.constant 0 : index
    %43 = vector.load %arg8[%c0_22, %c0_23] : memref<256x128xf32, #tpu.memory_space<vmem>>, vector<256x128xf32>
    tpu.vector_store %arg8[%c0_22, %c0_23], %42 {strides = array<i32>} : memref<256x128xf32, #tpu.memory_space<vmem>>, vector<256x128xf32>,
    return
  }
  func.func @transform_0(%arg0: i32) -> (i32, i32) {
    %c0_i32 = arith.constant 0 : i32
    %c0_i32_0 = arith.constant 0 : i32
    return %arg0, %c0_i32 : i32, i32
  }
  func.func @transform_1(%arg0: i32) -> (i32, i32) {
    %c0_i32 = arith.constant 0 : i32
    %c0_i32_0 = arith.constant 0 : i32
    %c0_i32_1 = arith.constant 0 : i32
    return %c0_i32, %c0_i32_0 : i32, i32
  }
  func.func @transform_2(%arg0: i32) -> (i32, i32) {
    %c0_i32 = arith.constant 0 : i32
    %c0_i32_0 = arith.constant 0 : i32
    %c0_i32_1 = arith.constant 0 : i32
    return %c0_i32, %c0_i32_0 : i32, i32
  }
  func.func @transform_3(%arg0: i32) -> (i32, i32) {
    %c0_i32 = arith.constant 0 : i32
    %c0_i32_0 = arith.constant 0 : i32
    %c0_i32_1 = arith.constant 0 : i32
    return %c0_i32, %c0_i32_0 : i32, i32
  }
  func.func @transform_4(%arg0: i32) -> (i32, i32) {
    %c0_i32 = arith.constant 0 : i32
    %c0_i32_0 = arith.constant 0 : i32
    %c0_i32_1 = arith.constant 0 : i32
    return %c0_i32, %c0_i32_0 : i32, i32
  }
  func.func @transform_5(%arg0: i32) -> (i32, i32) {
    %c0_i32 = arith.constant 0 : i32
    %c0_i32_0 = arith.constant 0 : i32
    %c0_i32_1 = arith.constant 0 : i32
    return %c0_i32, %c0_i32_0 : i32, i32
  }
  func.func @transform_6(%arg0: i32) -> (i32, i32) {
    %c0_i32 = arith.constant 0 : i32
    %c0_i32_0 = arith.constant 0 : i32
    %c0_i32_1 = arith.constant 0 : i32
    return %c0_i32, %c0_i32_0 : i32, i32
  }
  func.func @transform_7(%arg0: i32) -> (i32, i32) {
    %c0_i32 = arith.constant 0 : i32
    %c0_i32_0 = arith.constant 0 : i32
    return %arg0, %c0_i32 : i32, i32
  }
}

</mosaic_0001>

<bundles_post_ra>
// kernel: actor_critic_forward.1
= control target key start
LH: loop header
LB: loop body
LE: loop exit
PB: predicated region body
PF: predicated region fallthrough
CT: control target
= control target key end

     0   :  { %s2034_s24 = smov 0   ;;  %s2890_s0 = inlined_call_operand.vmem [shape: f32[512,8], index: 0, kind: input, shape index: {}]   ;;  %s2891_s1 = inlined_call_operand.vmem [shape: bf16[8,128], index: 1, kind: input, shape index: {}]   ;;  %s2892_s2 = inlined_call_operand.vmem [shape: f32[1,128], index: 2, kind: input, shape index: {}]   ;;  %s2893_s3 = inlined_call_operand.vmem [shape: bf16[128,128], index: 3, kind: input, shape index: {}]   ;;  %s2894_s4 = inlined_call_operand.vmem [shape: f32[1,128], index: 4, kind: input, shape index: {}]   ;;  %s2895_s5 = inlined_call_operand.vmem [shape: bf16[128,128], index: 5, kind: input, shape index: {}]   ;;  %s2896_s6 = inlined_call_operand.vmem [shape: f32[1,128], index: 6, kind: input, shape index: {}]   ;;  %s2897_s7 = inlined_call_operand.vmem [shape: f32[512,128], index: 7, kind: output, shape index: {}]  }
   0x1 LB: > { %s1589_s25 = sadd.s32 4294967295, %s1992_s24   ;;  %p1593_p0 = scmp.ge.s32.totalorder %s1992_s24, 1  ;;  %s1992_s24 = sphi %s2034_s24, %s17_s24  }
   0x2   : > { %p238_p1 = scmp.lt.s32.totalorder %s1992_s24, 3 }
   0x4   : > { %p239_p2 = pnand %p1593_p0, %p238_p1 }
   0x6   : > { %242 = sbr.rel (%p239_p2) target bundleno = 1061 (0x425), region = 48 }
   0xd   : > { %v331_v0 = vld [vmem:[%s2891_s1] sm:$0xf]  ;;  %vm388_vm0 = vcmask 1043456   ;;  %s1594_s28 = sshll.u32 %s1589_s25, 5  ;;  %vm339_vm1 = vcmask 64512   ;;  %v1843_v24 = vld [vmem:[%s2893_s3 + $0x8] sm:$0xff]  }
   0xe   : > { %v1842_v1 = vld [vmem:[%s2893_s3] sm:$0xff]   ;;  %1832 = vmatprep.subr.msk.bf16.mxu0 %vm388_vm0, %v331_v0  ;;  %v390_v2 = vsel %vm388_vm0, %v331_v0, 0  ;;  %p271_p3 = scmp.lt.s32.totalorder %s1594_s28, 63  ;;  %1833 = vmatprep.subr.msk.bf16.mxu1 %vm388_vm0, %v331_v0  ;;  %v1844_v30 = vld [vmem:[%s2893_s3 + $0x10] sm:$0xff]   ;;  %v1845_v38 = vld [vmem:[%s2893_s3 + $0x18] sm:$0xff]  }
   0xf   : > { %1701 = vmatpush3.bf16.msra.mxu0 %v390_v2  ;;  %1831 = vmatpush3.bf16.msra.mxu1 %v390_v2  ;;  %v1846_v46 = vld [vmem:[%s2893_s3 + $0x20] sm:$0xff]   ;;  %v1847_v51 = vld [vmem:[%s2893_s3 + $0x28] sm:$0xff]   ;;  %v1848_v56 = vld [vmem:[%s2893_s3 + $0x30] sm:$0xff]  }
  0x10   : > { %s2944_s28 = smov (!%p271_p3, %s1594_s28), 63  ;;  %1734 = vmatprep.subr.bf16.mxu1 %v1842_v1  ;;  %v1849_v57 = vld [vmem:[%s2893_s3 + $0x38] sm:$0xff]   ;;  %v1850_v58 = vld [vmem:[%s2895_s5] sm:$0xff]   ;;  %v1851_v59 = vld [vmem:[%s2895_s5 + $0x8] sm:$0xff]  }
  0x11   : > { %s1595_s8 = sshll.u32 %s2944_s28, 3  ;;  %1782 = vmatprep.subr.bf16.mxu0 %v1850_v58  ;;  %v1852_v60 = vld [vmem:[%s2895_s5 + $0x10] sm:$0xff]   ;;  %v1853_v61 = vld [vmem:[%s2895_s5 + $0x18] sm:$0xff]   ;;  %v1854_v62 = vld [vmem:[%s2895_s5 + $0x20] sm:$0xff]  }
  0x12   : > { %s2056_s11 = scalar_lea.vmem %s2890_s0, %s1595_s8  ;;  %v1855_v63 = vld [vmem:[%s2895_s5 + $0x28] sm:$0xff]   ;;  %v2148_v0 = vld [vmem:[%s2892_s2] ss:$0 sm:$0xff]  ;;  %s2725_s10 = scalar_lea.vmem %s2897_s7, %s1595_s8 }
  0x13   : > { %v283_v3 = vld [vmem:[%s2056_s11] sm:$0xff]  ;;  %v284_v4 = vld [vmem:[%s2056_s11 + $0x8] sm:$0xff]  ;;  %v285_v5 = vld [vmem:[%s2056_s11 + $0x10] sm:$0xff] }
  0x14   : > { %v315_v6 = vpack.c.bf16 %v284_v4, %v283_v3  ;;  %v286_v7 = vld [vmem:[%s2056_s11 + $0x18] sm:$0xff]  ;;  %v287_v8 = vld [vmem:[%s2056_s11 + $0x20] sm:$0xff]  ;;  %v288_v9 = vld [vmem:[%s2056_s11 + $0x28] sm:$0xff] }
  0x15   : > { %v316_v10 = vpack.c.bf16 %v286_v7, %v285_v5  ;;  %v317_v11 = vpack.c.bf16 %v288_v9, %v287_v8  ;;  %v289_v12 = vld [vmem:[%s2056_s11 + $0x30] sm:$0xff]  ;;  %v290_v13 = vld [vmem:[%s2056_s11 + $0x38] sm:$0xff]  ;;  %v291_v14 = vld [vmem:[%s2056_s11 + $0x40] sm:$0xff] }
  0x16   : > { %1702 = vmatprep.mubr.msk.bf16.mxu0 %vm339_vm1, %v315_v6  ;;  %v292_v15 = vld [vmem:[%s2056_s11 + $0x48] sm:$0xff]  ;;  %v299_v16 = vld [vmem:[%s2056_s11 + $0x80] sm:$0xff]  ;;  %v301_v19 = vld [vmem:[%s2056_s11 + $0x90] sm:$0xff]  ;;  %v318_v25 = vpack.c.bf16 %v290_v13, %v289_v12 }
  0x17   : > { %1703 = vmatmul.mubr.msk.bf16.vlgmr.msra.gmra.mrb[0].mxu0 %vm339_vm1, %v316_v10  ;;  %v300_v17 = vld [vmem:[%s2056_s11 + $0x88] sm:$0xff]  ;;  %v302_v20 = vld [vmem:[%s2056_s11 + $0x98] sm:$0xff]  ;;  %v303_v21 = vld [vmem:[%s2056_s11 + $0xa0] sm:$0xff]  ;;  %v319_v27 = vpack.c.bf16 %v292_v15, %v291_v14 }
  0x18   : > { %1706 = vmatprep.mubr.msk.bf16.mxu0 %vm339_vm1, %v317_v11  ;;  %v323_v18 = vpack.c.bf16 %v300_v17, %v299_v16  ;;  %v324_v22 = vpack.c.bf16 %v302_v20, %v301_v19  ;;  %v304_v23 = vld [vmem:[%s2056_s11 + $0xa8] sm:$0xff]  ;;  %v305_v28 = vld [vmem:[%s2056_s11 + $0xb0] sm:$0xff]  ;;  %v306_v29 = vld [vmem:[%s2056_s11 + $0xb8] sm:$0xff]  ;;  %1783 = vmatpush3.bf16.msra.mxu0 %v1850_v58 }
  0x19   : > { %v325_v26 = vpack.c.bf16 %v304_v23, %v303_v21  ;;  %v307_v31 = vld [vmem:[%s2056_s11 + $0xc0] sm:$0xff]  ;;  %v308_v32 = vld [vmem:[%s2056_s11 + $0xc8] sm:$0xff]  ;;  %v293_v33 = vld [vmem:[%s2056_s11 + $0x50] sm:$0xff]  ;;  %v326_v37 = vpack.c.bf16 %v306_v29, %v305_v28  ;;  %1784 = vmatprep.subr.bf16.mxu0 %v1851_v59 }
  0x1a   : > { %1718 = vmatprep.mubr.msk.bf16.mxu1 %vm339_vm1, %v323_v18  ;;  %v294_v34 = vld [vmem:[%s2056_s11 + $0x58] sm:$0xff]  ;;  %v295_v35 = vld [vmem:[%s2056_s11 + $0x60] sm:$0xff]  ;;  %v296_v36 = vld [vmem:[%s2056_s11 + $0x68] sm:$0xff]  ;;  %v327_v39 = vpack.c.bf16 %v308_v32, %v307_v31 }
  0x1b   : > { %1719 = vmatmul.mubr.msk.bf16.vlgmr.msra.gmra.mrb[0].mxu1 %vm339_vm1, %v324_v22  ;;  %v320_v40 = vpack.c.bf16 %v294_v34, %v293_v33  ;;  %v321_v41 = vpack.c.bf16 %v296_v36, %v295_v35  ;;  %v309_v42 = vld [vmem:[%s2056_s11 + $0xd0] sm:$0xff]  ;;  %v310_v43 = vld [vmem:[%s2056_s11 + $0xd8] sm:$0xff]  ;;  %v311_v44 = vld [vmem:[%s2056_s11 + $0xe0] sm:$0xff] }
  0x1c   : > { %1722 = vmatprep.mubr.msk.bf16.mxu1 %vm339_vm1, %v325_v26  ;;  %1735 = vmatpush3.bf16.msra.mxu1 %v1842_v1  ;;  %v312_v45 = vld [vmem:[%s2056_s11 + $0xe8] sm:$0xff]  ;;  %v297_v47 = vld [vmem:[%s2056_s11 + $0x70] sm:$0xff]  ;;  %v298_v48 = vld [vmem:[%s2056_s11 + $0x78] sm:$0xff]  ;;  %v328_v49 = vpack.c.bf16 %v310_v43, %v309_v42 }
  0x1d   : > { %1736 = vmatprep.subr.bf16.mxu1 %v1843_v24  ;;  %v329_v50 = vpack.c.bf16 %v312_v45, %v311_v44  ;;  %v322_v52 = vpack.c.bf16 %v298_v48, %v297_v47  ;;  %v313_v53 = vld [vmem:[%s2056_s11 + $0xf0] sm:$0xff]  ;;  %v314_v54 = vld [vmem:[%s2056_s11 + $0xf8] sm:$0xff]  ;;  %1785 = vmatpush3.bf16.msra.mxu0 %v1851_v59 }
  0x1e   : > { %v330_v55 = vpack.c.bf16 %v314_v54, %v313_v53  ;;  %1786 = vmatprep.subr.bf16.mxu0 %v1852_v60 }
  0x1f   : > { %1707 = vmatmul.mubr.msk.bf16.gmra.mrb[4].mxu0 %vm339_vm1, %v318_v25 }
  0x20   : > { %1710 = vmatprep.mubr.msk.bf16.mxu0 %vm339_vm1, %v319_v27  ;;  %1737 = vmatpush3.bf16.msra.mxu1 %v1843_v24 }
  0x21   : > { %1738 = vmatprep.subr.bf16.mxu1 %v1844_v30  ;;  %1787 = vmatpush3.bf16.msra.mxu0 %v1852_v60 }
  0x22   : > { %1788 = vmatprep.subr.bf16.mxu0 %v1853_v61 }
  0x23   : > { %1723 = vmatmul.mubr.msk.bf16.gmra.mrb[4].mxu1 %vm339_vm1, %v326_v37 }
  0x24   : > { %1726 = vmatprep.mubr.msk.bf16.mxu1 %vm339_vm1, %v327_v39  ;;  %1739 = vmatpush3.bf16.msra.mxu1 %v1844_v30 }
  0x25   : > { %1740 = vmatprep.subr.bf16.mxu1 %v1845_v38  ;;  %1789 = vmatpush3.bf16.msra.mxu0 %v1853_v61 }
  0x26   : > { %1790 = vmatprep.subr.bf16.mxu0 %v1854_v62 }
  0x27   : > { %1711 = vmatmul.mubr.msk.bf16.gmra.mrb[8].mxu0 %vm339_vm1, %v320_v40 }
  0x28   : > { %1714 = vmatprep.mubr.msk.bf16.mxu0 %vm339_vm1, %v321_v41  ;;  %1741 = vmatpush3.bf16.msra.mxu1 %v1845_v38 }
  0x29   : > { %1742 = vmatprep.subr.bf16.mxu1 %v1846_v46  ;;  %1791 = vmatpush3.bf16.msra.mxu0 %v1854_v62 }
  0x2a   : > { %1792 = vmatprep.subr.bf16.mxu0 %v1855_v63 }
  0x2b   : > { %1727 = vmatmul.mubr.msk.bf16.gmra.mrb[8].mxu1 %vm339_vm1, %v328_v49 }
  0x2c   : > { %1730 = vmatprep.mubr.msk.bf16.mxu1 %vm339_vm1, %v329_v50  ;;  %1743 = vmatpush3.bf16.msra.mxu1 %v1846_v46 }
  0x2d   : > { %1744 = vmatprep.subr.bf16.mxu1 %v1847_v51  ;;  %1793 = vmatpush3.bf16.msra.mxu0 %v1855_v63 }
  0x2f   : > { %1715 = vmatmul.mubr.msk.bf16.gmra.mrb[12].mxu0 %vm339_vm1, %v322_v52 }
  0x30   : > { %1745 = vmatpush3.bf16.msra.mxu1 %v1847_v51 }
  0x31   : > { %1746 = vmatprep.subr.bf16.mxu1 %v1848_v56 }
  0x33   : > { %1731 = vmatmul.mubr.msk.bf16.gmra.mrb[12].mxu1 %vm339_vm1, %v330_v55 }
  0x34   : > { %1747 = vmatpush3.bf16.msra.mxu1 %v1848_v56 }
  0x35   : > { %1748 = vmatprep.subr.bf16.mxu1 %v1849_v57 }
  0x38   : > { %1749 = vmatpush3.bf16.msra.mxu1 %v1849_v57 }
  0xea   : > { %v1704_v1 = vpop.f32.mrb[0].mxu0 }
  0xeb   : > { %v435_v2 = vadd.f32 %v1704_v1, %v2148_v0  ;;  %v426_v3 = vpop.f32.mrb[1].mxu0 }
  0xec   : > { %v427_v4 = vadd.f32 %v2148_v0, %v426_v3  ;;  %v1705_v5 = vpop.f32.mrb[2].mxu0 }
  0xed   : > { %v438_v6 = vadd.f32 %v1705_v5, %v2148_v0  ;;  %v429_v7 = vpop.f32.mrb[3].mxu0  ;;  %v555_v9 = vmax.f32 %v435_v2, 0.0 }
  0xee   : > { %v430_v8 = vadd.f32 %v2148_v0, %v429_v7  ;;  %v1720_v11 = vpop.f32.mrb[0].mxu1  ;;  %v553_v12 = vmax.f32 %v427_v4, 0.0 }
  0xef   : > { %v556_v10 = vmax.f32 %v438_v6, 0.0  ;;  %v499_v14 = vadd.f32 %v1720_v11, %v2148_v0  ;;  %v490_v15 = vpop.f32.mrb[1].mxu1 }
  0xf0   : > { %v554_v13 = vmax.f32 %v430_v8, 0.0  ;;  %v491_v17 = vadd.f32 %v2148_v0, %v490_v15  ;;  %v1721_v18 = vpop.f32.mrb[2].mxu1 }
  0xf1   : > { %v586_v16 = vpack.c.bf16 %v556_v10, %v555_v9  ;;  %v571_v21 = vmax.f32 %v499_v14, 0.0  ;;  %v502_v22 = vadd.f32 %v1721_v18, %v2148_v0  ;;  %v493_v23 = vpop.f32.mrb[3].mxu1 }
  0xf2   : > { %v585_v19 = vpack.c.bf16 %v554_v13, %v553_v12  ;;  %v1708_v20 = vpop.f32.mrb[4].mxu0  ;;  %v569_v26 = vmax.f32 %v491_v17, 0.0  ;;  %v494_v27 = vadd.f32 %v2148_v0, %v493_v23 }
  0xf3   : > { %v451_v24 = vadd.f32 %v1708_v20, %v2148_v0  ;;  %v442_v25 = vpop.f32.mrb[5].mxu0  ;;  %v572_v30 = vmax.f32 %v502_v22, 0.0 }
  0xf4   : > { %v443_v28 = vadd.f32 %v2148_v0, %v442_v25  ;;  %v1709_v29 = vpop.f32.mrb[6].mxu0  ;;  %1750 = vmatprep.mubr.bf16.mxu1 %v585_v19  ;;  %v570_v34 = vmax.f32 %v494_v27, 0.0 }
  0xf5   : > { %v559_v31 = vmax.f32 %v451_v24, 0.0  ;;  %v454_v32 = vadd.f32 %v1709_v29, %v2148_v0  ;;  %v445_v33 = vpop.f32.mrb[7].mxu0  ;;  %1751 = vmatmul.mubr.bf16.vlgmr.msra.gmra.mrb[16].mxu1 %v586_v16  ;;  %v2162_v36 = vpack.c.bf16 %v572_v30, %v571_v21 }
  0xf6   : > { %v446_v35 = vadd.f32 %v2148_v0, %v445_v33  ;;  %v2164_v38 = vpack.c.bf16 %v570_v34, %v569_v26  ;;  %v1724_v39 = vpop.f32.mrb[4].mxu1  ;;  %v557_v40 = vmax.f32 %v443_v28, 0.0 }
  0xf7   : > { %v560_v37 = vmax.f32 %v454_v32, 0.0  ;;  %v515_v42 = vadd.f32 %v1724_v39, %v2148_v0  ;;  %v506_v43 = vpop.f32.mrb[5].mxu1 }
  0xf8   : > { %v558_v41 = vmax.f32 %v446_v35, 0.0  ;;  %v507_v45 = vadd.f32 %v2148_v0, %v506_v43  ;;  %v1725_v46 = vpop.f32.mrb[6].mxu1 }
  0xf9   : > { %v588_v44 = vpack.c.bf16 %v560_v37, %v559_v31  ;;  %v575_v49 = vmax.f32 %v515_v42, 0.0  ;;  %v518_v50 = vadd.f32 %v1725_v46, %v2148_v0  ;;  %v509_v51 = vpop.f32.mrb[7].mxu1 }
  0xfa   : > { %v587_v47 = vpack.c.bf16 %v558_v41, %v557_v40  ;;  %v1712_v48 = vpop.f32.mrb[8].mxu0  ;;  %v573_v54 = vmax.f32 %v507_v45, 0.0  ;;  %v510_v55 = vadd.f32 %v2148_v0, %v509_v51 }
  0xfb   : > { %v467_v52 = vadd.f32 %v1712_v48, %v2148_v0  ;;  %v458_v53 = vpop.f32.mrb[9].mxu0  ;;  %v576_v58 = vmax.f32 %v518_v50, 0.0 }
  0xfc   : > { %v459_v56 = vadd.f32 %v2148_v0, %v458_v53  ;;  %v1713_v57 = vpop.f32.mrb[10].mxu0  ;;  %1754 = vmatprep.mubr.bf16.mxu1 %v587_v47  ;;  %v574_v62 = vmax.f32 %v510_v55, 0.0 }
  0xfd   : > { %v563_v59 = vmax.f32 %v467_v52, 0.0  ;;  %v470_v60 = vadd.f32 %v1713_v57, %v2148_v0  ;;  %v461_v61 = vpop.f32.mrb[11].mxu0  ;;  %1755 = vmatmul.mubr.bf16.gmra.mrb[20].mxu1 %v588_v44  ;;  %v596_v1 = vpack.c.bf16 %v576_v58, %v575_v49 }
  0xfe   : > { %v462_v63 = vadd.f32 %v2148_v0, %v461_v61  ;;  %v595_v3 = vpack.c.bf16 %v574_v62, %v573_v54  ;;  %v1728_v4 = vpop.f32.mrb[8].mxu1  ;;  %v561_v5 = vmax.f32 %v459_v56, 0.0 }
  0xff   : > { %v564_v2 = vmax.f32 %v470_v60, 0.0  ;;  %v531_v7 = vadd.f32 %v1728_v4, %v2148_v0  ;;  %v522_v8 = vpop.f32.mrb[9].mxu1 }
 0x100   : > { %v562_v6 = vmax.f32 %v462_v63, 0.0  ;;  %v523_v10 = vadd.f32 %v2148_v0, %v522_v8  ;;  %v1729_v11 = vpop.f32.mrb[10].mxu1 }
 0x101   : > { %v590_v9 = vpack.c.bf16 %v564_v2, %v563_v59  ;;  %v579_v14 = vmax.f32 %v531_v7, 0.0  ;;  %v534_v15 = vadd.f32 %v1729_v11, %v2148_v0  ;;  %v525_v16 = vpop.f32.mrb[11].mxu1 }
 0x102   : > { %v589_v12 = vpack.c.bf16 %v562_v6, %v561_v5  ;;  %v1716_v13 = vpop.f32.mrb[12].mxu0  ;;  %v577_v19 = vmax.f32 %v523_v10, 0.0  ;;  %v526_v20 = vadd.f32 %v2148_v0, %v525_v16 }
 0x103   : > { %v483_v17 = vadd.f32 %v1716_v13, %v2148_v0  ;;  %v474_v18 = vpop.f32.mrb[13].mxu0  ;;  %v580_v23 = vmax.f32 %v534_v15, 0.0 }
 0x104   : > { %v475_v21 = vadd.f32 %v2148_v0, %v474_v18  ;;  %v1717_v22 = vpop.f32.mrb[14].mxu0  ;;  %1758 = vmatprep.mubr.bf16.mxu1 %v589_v12  ;;  %v578_v27 = vmax.f32 %v526_v20, 0.0 }
 0x105   : > { %v567_v24 = vmax.f32 %v483_v17, 0.0  ;;  %v486_v25 = vadd.f32 %v1717_v22, %v2148_v0  ;;  %v477_v26 = vpop.f32.mrb[15].mxu0  ;;  %1759 = vmatmul.mubr.bf16.gmra.mrb[24].mxu1 %v590_v9  ;;  %v598_v29 = vpack.c.bf16 %v580_v23, %v579_v14 }
 0x106   : > { %v478_v28 = vadd.f32 %v2148_v0, %v477_v26  ;;  %v597_v31 = vpack.c.bf16 %v578_v27, %v577_v19  ;;  %v1732_v32 = vpop.f32.mrb[12].mxu1  ;;  %v565_v33 = vmax.f32 %v475_v21, 0.0 }
 0x107   : > { %v568_v30 = vmax.f32 %v486_v25, 0.0  ;;  %v547_v35 = vadd.f32 %v1732_v32, %v2148_v0  ;;  %v538_v37 = vpop.f32.mrb[13].mxu1 }
 0x108   : > { %v566_v34 = vmax.f32 %v478_v28, 0.0  ;;  %v539_v40 = vadd.f32 %v2148_v0, %v538_v37  ;;  %v1733_v41 = vpop.f32.mrb[14].mxu1 }
 0x109   : > { %v592_v39 = vpack.c.bf16 %v568_v30, %v567_v24  ;;  %v583_v43 = vmax.f32 %v547_v35, 0.0  ;;  %v550_v44 = vadd.f32 %v1733_v41, %v2148_v0  ;;  %v541_v45 = vpop.f32.mrb[15].mxu1 }
 0x10a   : > { %v591_v42 = vpack.c.bf16 %v566_v34, %v565_v33  ;;  %v581_v46 = vmax.f32 %v539_v40, 0.0  ;;  %v542_v47 = vadd.f32 %v2148_v0, %v541_v45  ;;  %v1856_v0 = vld [vmem:[%s2895_s5 + $0x30] sm:$0xff]  }
 0x10b   : > { %v584_v48 = vmax.f32 %v550_v44, 0.0  ;;  %1794 = vmatprep.subr.bf16.mxu0 %v1856_v0 }
 0x10c   : > { %1762 = vmatprep.mubr.bf16.mxu1 %v591_v42  ;;  %v582_v49 = vmax.f32 %v542_v47, 0.0  ;;  %1795 = vmatpush3.bf16.msra.mxu0 %v1856_v0 }
 0x10d   : > { %1763 = vmatmul.mubr.bf16.gmra.mrb[28].mxu1 %v592_v39  ;;  %v600_v50 = vpack.c.bf16 %v584_v48, %v583_v43 }
 0x10e   : > { %1766 = vmatprep.mubr.bf16.mxu1 %v2164_v38  ;;  %v599_v51 = vpack.c.bf16 %v582_v49, %v581_v46  ;;  %v1857_v38 = vld [vmem:[%s2895_s5 + $0x38] sm:$0xff]  }
 0x10f   : > { %1796 = vmatprep.subr.bf16.mxu0 %v1857_v38 }
 0x110   : > { %1797 = vmatpush3.bf16.msra.mxu0 %v1857_v38 }
 0x115   : > { %1767 = vmatmul.mubr.bf16.gmra.mrb[32].mxu1 %v2162_v36  ;;  %v2197_v36 = vld [vmem:[%s2894_s4] ss:$0 sm:$0xff] }
 0x116   : > { %1770 = vmatprep.mubr.bf16.mxu1 %v595_v3 }
 0x11d   : > { %1771 = vmatmul.mubr.bf16.gmra.mrb[36].mxu1 %v596_v1 }
 0x11e   : > { %1774 = vmatprep.mubr.bf16.mxu1 %v597_v31 }
 0x125   : > { %1775 = vmatmul.mubr.bf16.gmra.mrb[40].mxu1 %v598_v29 }
 0x126   : > { %1778 = vmatprep.mubr.bf16.mxu1 %v599_v51 }
 0x12d   : > { %1779 = vmatmul.mubr.bf16.gmra.mrb[44].mxu1 %v600_v50 }
 0x1c8   : > { %v1752_v52 = vpop.f32.mrb[16].mxu1 }
 0x1c9   : > { %v715_v53 = vadd.f32 %v1752_v52, %v2197_v36  ;;  %v706_v54 = vpop.f32.mrb[17].mxu1 }
 0x1ca   : > { %v707_v55 = vadd.f32 %v2197_v36, %v706_v54  ;;  %v1753_v56 = vpop.f32.mrb[18].mxu1 }
 0x1cb   : > { %v718_v57 = vadd.f32 %v1753_v56, %v2197_v36  ;;  %v709_v58 = vpop.f32.mrb[19].mxu1  ;;  %v835_v60 = vmax.f32 %v715_v53, 0.0 }
 0x1cc   : > { %v710_v59 = vadd.f32 %v2197_v36, %v709_v58  ;;  %v833_v62 = vmax.f32 %v707_v55, 0.0 }
 0x1cd   : > { %v836_v61 = vmax.f32 %v718_v57, 0.0 }
 0x1ce   : > { %v834_v63 = vmax.f32 %v710_v59, 0.0 }
 0x1cf   : > { %v866_v1 = vpack.c.bf16 %v836_v61, %v835_v60 }
 0x1d0   : > { %v865_v2 = vpack.c.bf16 %v834_v63, %v833_v62  ;;  %v1756_v3 = vpop.f32.mrb[20].mxu1 }
 0x1d1   : > { %v731_v4 = vadd.f32 %v1756_v3, %v2197_v36  ;;  %v722_v5 = vpop.f32.mrb[21].mxu1 }
 0x1d2   : > { %v723_v6 = vadd.f32 %v2197_v36, %v722_v5  ;;  %v1757_v7 = vpop.f32.mrb[22].mxu1  ;;  %1798 = vmatprep.mubr.bf16.mxu0 %v865_v2 }
 0x1d3   : > { %v734_v8 = vadd.f32 %v1757_v7, %v2197_v36  ;;  %v725_v9 = vpop.f32.mrb[23].mxu1  ;;  %1799 = vmatmul.mubr.bf16.vlgmr.msra.gmra.mrb[16].mxu0 %v866_v1  ;;  %v839_v11 = vmax.f32 %v731_v4, 0.0 }
 0x1d4   : > { %v726_v10 = vadd.f32 %v2197_v36, %v725_v9  ;;  %v837_v13 = vmax.f32 %v723_v6, 0.0 }
 0x1d5   : > { %v840_v12 = vmax.f32 %v734_v8, 0.0 }
 0x1d6   : > { %v838_v14 = vmax.f32 %v726_v10, 0.0 }
 0x1d7   : > { %v868_v15 = vpack.c.bf16 %v840_v12, %v839_v11 }
 0x1d8   : > { %v867_v16 = vpack.c.bf16 %v838_v14, %v837_v13  ;;  %v1760_v17 = vpop.f32.mrb[24].mxu1 }
 0x1d9   : > { %v747_v18 = vadd.f32 %v1760_v17, %v2197_v36  ;;  %v738_v19 = vpop.f32.mrb[25].mxu1 }
 0x1da   : > { %v739_v20 = vadd.f32 %v2197_v36, %v738_v19  ;;  %v1761_v21 = vpop.f32.mrb[26].mxu1  ;;  %1802 = vmatprep.mubr.bf16.mxu0 %v867_v16 }
 0x1db   : > { %v750_v22 = vadd.f32 %v1761_v21, %v2197_v36  ;;  %v741_v23 = vpop.f32.mrb[27].mxu1  ;;  %1803 = vmatmul.mubr.bf16.gmra.mrb[20].mxu0 %v868_v15  ;;  %v843_v25 = vmax.f32 %v747_v18, 0.0 }
 0x1dc   : > { %v742_v24 = vadd.f32 %v2197_v36, %v741_v23  ;;  %v841_v27 = vmax.f32 %v739_v20, 0.0 }
 0x1dd   : > { %v844_v26 = vmax.f32 %v750_v22, 0.0 }
 0x1de   : > { %v842_v28 = vmax.f32 %v742_v24, 0.0 }
 0x1df   : > { %v870_v29 = vpack.c.bf16 %v844_v26, %v843_v25 }
 0x1e0   : > { %v869_v30 = vpack.c.bf16 %v842_v28, %v841_v27  ;;  %v1764_v31 = vpop.f32.mrb[28].mxu1 }
 0x1e1   : > { %v763_v32 = vadd.f32 %v1764_v31, %v2197_v36  ;;  %v754_v33 = vpop.f32.mrb[29].mxu1 }
 0x1e2   : > { %v755_v34 = vadd.f32 %v2197_v36, %v754_v33  ;;  %v1765_v35 = vpop.f32.mrb[30].mxu1  ;;  %1806 = vmatprep.mubr.bf16.mxu0 %v869_v30 }
 0x1e3   : > { %v766_v37 = vadd.f32 %v1765_v35, %v2197_v36  ;;  %v757_v39 = vpop.f32.mrb[31].mxu1  ;;  %1807 = vmatmul.mubr.bf16.gmra.mrb[24].mxu0 %v870_v29  ;;  %v847_v41 = vmax.f32 %v763_v32, 0.0 }
 0x1e4   : > { %v758_v40 = vadd.f32 %v2197_v36, %v757_v39  ;;  %v845_v43 = vmax.f32 %v755_v34, 0.0 }
 0x1e5   : > { %v848_v42 = vmax.f32 %v766_v37, 0.0 }
 0x1e6   : > { %v846_v44 = vmax.f32 %v758_v40, 0.0  ;;  %v1113_v40 = vlaneseq }
 0x1e7   : > { %v872_v45 = vpack.c.bf16 %v848_v42, %v847_v41  ;;  %v2236_v42 = vld [vmem:[%s2896_s6] ss:$0 sm:$0xff] }
 0x1e8   : > { %v871_v46 = vpack.c.bf16 %v846_v44, %v845_v43  ;;  %v1768_v47 = vpop.f32.mrb[32].mxu1  ;;  %v2231_v41 = vand.u32 127, %v1113_v40 }
 0x1e9   : > { %v779_v48 = vadd.f32 %v1768_v47, %v2197_v36  ;;  %v770_v49 = vpop.f32.mrb[33].mxu1 }
 0x1ea   : > { %v771_v50 = vadd.f32 %v2197_v36, %v770_v49  ;;  %v1769_v51 = vpop.f32.mrb[34].mxu1  ;;  %1810 = vmatprep.mubr.bf16.mxu0 %v871_v46  ;;  %vm1115_vm2 = vcmp.lt.s32.totalorder %v2231_v41, 2  ;;  %vm1468_vm3 = vcmp.eq.s32.totalorder %v2231_v41, 2 }
 0x1eb   : > { %v782_v0 = vadd.f32 %v1769_v51, %v2197_v36  ;;  %v773_v38 = vpop.f32.mrb[35].mxu1  ;;  %1811 = vmatmul.mubr.bf16.gmra.mrb[28].mxu0 %v872_v45  ;;  %v851_v53 = vmax.f32 %v779_v48, 0.0 }
 0x1ec   : > { %v774_v52 = vadd.f32 %v2197_v36, %v773_v38  ;;  %v849_v55 = vmax.f32 %v771_v50, 0.0 }
 0x1ed   : > { %v852_v54 = vmax.f32 %v782_v0, 0.0 }
 0x1ee   : > { %v850_v56 = vmax.f32 %v774_v52, 0.0 }
 0x1ef   : > { %v874_v57 = vpack.c.bf16 %v852_v54, %v851_v53 }
 0x1f0   : > { %v873_v58 = vpack.c.bf16 %v850_v56, %v849_v55  ;;  %v1772_v59 = vpop.f32.mrb[36].mxu1 }
 0x1f1   : > { %v795_v60 = vadd.f32 %v1772_v59, %v2197_v36  ;;  %v786_v61 = vpop.f32.mrb[37].mxu1 }
 0x1f2   : > { %v787_v62 = vadd.f32 %v2197_v36, %v786_v61  ;;  %v1773_v63 = vpop.f32.mrb[38].mxu1  ;;  %1814 = vmatprep.mubr.bf16.mxu0 %v873_v58 }
 0x1f3   : > { %v798_v1 = vadd.f32 %v1773_v63, %v2197_v36  ;;  %v789_v2 = vpop.f32.mrb[39].mxu1  ;;  %1815 = vmatmul.mubr.bf16.gmra.mrb[32].mxu0 %v874_v57  ;;  %v855_v4 = vmax.f32 %v795_v60, 0.0 }
 0x1f4   : > { %v790_v3 = vadd.f32 %v2197_v36, %v789_v2  ;;  %v853_v6 = vmax.f32 %v787_v62, 0.0 }
 0x1f5   : > { %v856_v5 = vmax.f32 %v798_v1, 0.0 }
 0x1f6   : > { %v854_v7 = vmax.f32 %v790_v3, 0.0 }
 0x1f7   : > { %v876_v8 = vpack.c.bf16 %v856_v5, %v855_v4 }
 0x1f8   : > { %v875_v9 = vpack.c.bf16 %v854_v7, %v853_v6  ;;  %v1776_v10 = vpop.f32.mrb[40].mxu1 }
 0x1f9   : > { %v811_v11 = vadd.f32 %v1776_v10, %v2197_v36  ;;  %v802_v12 = vpop.f32.mrb[41].mxu1 }
 0x1fa   : > { %v803_v13 = vadd.f32 %v2197_v36, %v802_v12  ;;  %v1777_v14 = vpop.f32.mrb[42].mxu1  ;;  %1818 = vmatprep.mubr.bf16.mxu0 %v875_v9 }
 0x1fb   : > { %v814_v15 = vadd.f32 %v1777_v14, %v2197_v36  ;;  %v805_v16 = vpop.f32.mrb[43].mxu1  ;;  %1819 = vmatmul.mubr.bf16.gmra.mrb[36].mxu0 %v876_v8  ;;  %v859_v18 = vmax.f32 %v811_v11, 0.0 }
 0x1fc   : > { %v806_v17 = vadd.f32 %v2197_v36, %v805_v16  ;;  %v857_v20 = vmax.f32 %v803_v13, 0.0 }
 0x1fd   : > { %v860_v19 = vmax.f32 %v814_v15, 0.0 }
 0x1fe   : > { %v858_v21 = vmax.f32 %v806_v17, 0.0 }
 0x1ff   : > { %v878_v22 = vpack.c.bf16 %v860_v19, %v859_v18 }
 0x200   : > { %v877_v23 = vpack.c.bf16 %v858_v21, %v857_v20  ;;  %v1780_v24 = vpop.f32.mrb[44].mxu1 }
 0x201   : > { %v827_v25 = vadd.f32 %v1780_v24, %v2197_v36  ;;  %v818_v26 = vpop.f32.mrb[45].mxu1 }
 0x202   : > { %v819_v27 = vadd.f32 %v2197_v36, %v818_v26  ;;  %v1781_v28 = vpop.f32.mrb[46].mxu1  ;;  %1822 = vmatprep.mubr.bf16.mxu0 %v877_v23 }
 0x203   : > { %v830_v29 = vadd.f32 %v1781_v28, %v2197_v36  ;;  %v821_v30 = vpop.f32.mrb[47].mxu1  ;;  %1823 = vmatmul.mubr.bf16.gmra.mrb[40].mxu0 %v878_v22  ;;  %v863_v32 = vmax.f32 %v827_v25, 0.0 }
 0x204   : > { %v822_v31 = vadd.f32 %v2197_v36, %v821_v30  ;;  %v861_v34 = vmax.f32 %v819_v27, 0.0 }
 0x205   : > { %v864_v33 = vmax.f32 %v830_v29, 0.0 }
 0x206   : > { %v862_v35 = vmax.f32 %v822_v31, 0.0 }
 0x207   : > { %v880_v37 = vpack.c.bf16 %v864_v33, %v863_v32 }
 0x208   : > { %v879_v39 = vpack.c.bf16 %v862_v35, %v861_v34 }
 0x20a   : > { %1826 = vmatprep.mubr.bf16.mxu0 %v879_v39 }
 0x20b   : > { %1827 = vmatmul.mubr.bf16.gmra.mrb[44].mxu0 %v880_v37 }
 0x2a6   : > { %v1800_v43 = vpop.f32.mrb[16].mxu0 }
 0x2a7   : > { %v2240_v36 = vadd.f32 %v1800_v43, %v2236_v42  ;;  %v986_v44 = vpop.f32.mrb[17].mxu0 }
 0x2a8   : > { %v2243_v45 = vadd.f32 %v2236_v42, %v986_v44  ;;  %v1801_v46 = vpop.f32.mrb[18].mxu0 }
 0x2a9   : > { %v2246_v47 = vadd.f32 %v1801_v46, %v2236_v42  ;;  %v989_v48 = vpop.f32.mrb[19].mxu0  ;;  %v2251_v49 = vsel %vm1115_vm2, %v2240_v36, -1e+30 }
 0x2aa   : > { %v2254_v50 = vadd.f32 %v2236_v42, %v989_v48  ;;  %1152 = vmax.xlane.f32.xlu1 %v2251_v49  ;;  %v2260_v51 = vsel %vm1115_vm2, %v2243_v45, -1e+30 }
 0x2ab   : > { %1148 = vmax.xlane.f32.xlu0 %v2260_v51  ;;  %v2266_v0 = vsel %vm1115_vm2, %v2246_v47, -1e+30 }
 0x2ac   : > { %v2272_v52 = vsel %vm1115_vm2, %v2254_v50, -1e+30 }
 0x2ae   : > { %1154 = vmax.xlane.f32.xlu1 %v2266_v0  ;;  %v1804_v38 = vpop.f32.mrb[20].mxu0 }
 0x2af   : > { %v2275_v53 = vadd.f32 %v1804_v38, %v2236_v42  ;;  %v1002_v54 = vpop.f32.mrb[21].mxu0  ;;  %1150 = vmax.xlane.f32.xlu0 %v2272_v52 }
 0x2b0   : > { %v1805_v55 = vpop.f32.mrb[22].mxu0  ;;  %v2287_v59 = vadd.f32 %v2236_v42, %v1002_v54 }
 0x2b1   : > { %v2279_v56 = vadd.f32 %v1805_v55, %v2236_v42  ;;  %v1005_v57 = vpop.f32.mrb[23].mxu0  ;;  %v2284_v58 = vsel %vm1115_vm2, %v2275_v53, -1e+30 }
 0x2b2   : > { %v2290_v60 = vadd.f32 %v2236_v42, %v1005_v57  ;;  %v2302_v63 = vsel %vm1115_vm2, %v2287_v59, -1e+30 }
 0x2b3   : > { %1160 = vmax.xlane.f32.xlu0 %v2284_v58  ;;  %v2296_v61 = vsel %vm1115_vm2, %v2279_v56, -1e+30 }
 0x2b4   : > { %1162 = vmax.xlane.f32.xlu1 %v2296_v61  ;;  %v2311_v3 = vsel %vm1115_vm2, %v2290_v60, -1e+30 }
 0x2b6   : > { %v1808_v62 = vpop.f32.mrb[24].mxu0 }
 0x2b7   : > { %v2305_v1 = vadd.f32 %v1808_v62, %v2236_v42  ;;  %v1018_v2 = vpop.f32.mrb[25].mxu0  ;;  %1156 = vmax.xlane.f32.xlu0 %v2302_v63 }
 0x2b8   : > { %v1809_v4 = vpop.f32.mrb[26].mxu0  ;;  %1158 = vmax.xlane.f32.xlu1 %v2311_v3  ;;  %v2323_v8 = vadd.f32 %v2236_v42, %v1018_v2 }
 0x2b9   : > { %v2315_v5 = vadd.f32 %v1809_v4, %v2236_v42  ;;  %v1021_v6 = vpop.f32.mrb[27].mxu0  ;;  %v2320_v7 = vsel %vm1115_vm2, %v2305_v1, -1e+30 }
 0x2ba   : > { %v2326_v9 = vadd.f32 %v2236_v42, %v1021_v6  ;;  %v2338_v12 = vsel %vm1115_vm2, %v2323_v8, -1e+30 }
 0x2bb   : > { %1168 = vmax.xlane.f32.xlu0 %v2320_v7  ;;  %v2332_v10 = vsel %vm1115_vm2, %v2315_v5, -1e+30 }
 0x2bc   : > { %1170 = vmax.xlane.f32.xlu1 %v2332_v10  ;;  %v2347_v15 = vsel %vm1115_vm2, %v2326_v9, -1e+30 }
 0x2be   : > { %v1812_v11 = vpop.f32.mrb[28].mxu0 }
 0x2bf   : > { %v2341_v13 = vadd.f32 %v1812_v11, %v2236_v42  ;;  %v1034_v14 = vpop.f32.mrb[29].mxu0  ;;  %1164 = vmax.xlane.f32.xlu0 %v2338_v12 }
 0x2c0   : > { %v1813_v16 = vpop.f32.mrb[30].mxu0  ;;  %1166 = vmax.xlane.f32.xlu1 %v2347_v15  ;;  %v2359_v20 = vadd.f32 %v2236_v42, %v1034_v14 }
 0x2c1   : > { %v2351_v17 = vadd.f32 %v1813_v16, %v2236_v42  ;;  %v1037_v18 = vpop.f32.mrb[31].mxu0  ;;  %v2356_v19 = vsel %vm1115_vm2, %v2341_v13, -1e+30 }
 0x2c2   : > { %v2362_v21 = vadd.f32 %v2236_v42, %v1037_v18  ;;  %v2374_v24 = vsel %vm1115_vm2, %v2359_v20, -1e+30 }
 0x2c3   : > { %1176 = vmax.xlane.f32.xlu0 %v2356_v19  ;;  %v2368_v22 = vsel %vm1115_vm2, %v2351_v17, -1e+30 }
 0x2c4   : > { %1178 = vmax.xlane.f32.xlu1 %v2368_v22  ;;  %v2383_v27 = vsel %vm1115_vm2, %v2362_v21, -1e+30 }
 0x2c6   : > { %v1816_v23 = vpop.f32.mrb[32].mxu0 }
 0x2c7   : > { %v2377_v25 = vadd.f32 %v1816_v23, %v2236_v42  ;;  %v1050_v26 = vpop.f32.mrb[33].mxu0  ;;  %1172 = vmax.xlane.f32.xlu0 %v2374_v24 }
 0x2c8   : > { %v1817_v28 = vpop.f32.mrb[34].mxu0  ;;  %1174 = vmax.xlane.f32.xlu1 %v2383_v27  ;;  %v2395_v32 = vadd.f32 %v2236_v42, %v1050_v26 }
 0x2c9   : > { %v2387_v29 = vadd.f32 %v1817_v28, %v2236_v42  ;;  %v1053_v30 = vpop.f32.mrb[35].mxu0  ;;  %v2392_v31 = vsel %vm1115_vm2, %v2377_v25, -1e+30 }
 0x2ca   : > { %2914 = vst [vmem:[#allocation3_spill] sm:$0xff] %v2395_v32  ;;  %v2398_v33 = vadd.f32 %v2236_v42, %v1053_v30  ;;  %v2410_v37 = vsel %vm1115_vm2, %v2395_v32, -1e+30 }
 0x2cb   : > { %2913 = vst [vmem:[#allocation2_spill] sm:$0xff] %v2387_v29  ;;  %1184 = vmax.xlane.f32.xlu0 %v2392_v31  ;;  %v2404_v34 = vsel %vm1115_vm2, %v2387_v29, -1e+30 }
 0x2cc   : > { %2915 = vst [vmem:[#allocation4_spill] sm:$0xff] %v2398_v33  ;;  %1186 = vmax.xlane.f32.xlu1 %v2404_v34  ;;  %v2419_v43 = vsel %vm1115_vm2, %v2398_v33, -1e+30 }
 0x2ce   : > { %v1820_v35 = vpop.f32.mrb[36].mxu0 }
 0x2cf   : > { %v2413_v39 = vadd.f32 %v1820_v35, %v2236_v42  ;;  %v1066_v40 = vpop.f32.mrb[37].mxu0  ;;  %1180 = vmax.xlane.f32.xlu0 %v2410_v37 }
 0x2d0   : > { %v1821_v44 = vpop.f32.mrb[38].mxu0  ;;  %1182 = vmax.xlane.f32.xlu1 %v2419_v43  ;;  %v2431_v54 = vadd.f32 %v2236_v42, %v1066_v40 }
 0x2d1   : > { %2916 = vst [vmem:[#allocation5_spill] sm:$0xff] %v2413_v39  ;;  %v2423_v46 = vadd.f32 %v1821_v44, %v2236_v42  ;;  %v1069_v48 = vpop.f32.mrb[39].mxu0  ;;  %v2428_v38 = vsel %vm1115_vm2, %v2413_v39, -1e+30 }
 0x2d2   : > { %2918 = vst [vmem:[#allocation7_spill] sm:$0xff] %v2431_v54  ;;  %v2434_v55 = vadd.f32 %v2236_v42, %v1069_v48  ;;  %v2446_v2 = vsel %vm1115_vm2, %v2431_v54, -1e+30 }
 0x2d3   : > { %2917 = vst [vmem:[#allocation6_spill] sm:$0xff] %v2423_v46  ;;  %1192 = vmax.xlane.f32.xlu0 %v2428_v38  ;;  %v2440_v57 = vsel %vm1115_vm2, %v2423_v46, -1e+30 }
 0x2d4   : > { %2919 = vst [vmem:[#allocation8_spill] sm:$0xff] %v2434_v55  ;;  %1194 = vmax.xlane.f32.xlu1 %v2440_v57  ;;  %v2455_v11 = vsel %vm1115_vm2, %v2434_v55, -1e+30 }
 0x2d6   : > { %v1824_v62 = vpop.f32.mrb[40].mxu0 }
 0x2d7   : > { %v2449_v4 = vadd.f32 %v1824_v62, %v2236_v42  ;;  %v1082_v6 = vpop.f32.mrb[41].mxu0  ;;  %1188 = vmax.xlane.f32.xlu0 %v2446_v2 }
 0x2d8   : > { %v1825_v14 = vpop.f32.mrb[42].mxu0  ;;  %1190 = vmax.xlane.f32.xlu1 %v2455_v11  ;;  %v2467_v26 = vadd.f32 %v2236_v42, %v1082_v6 }
 0x2d9   : > { %2920 = vst [vmem:[#allocation9_spill] sm:$0xff] %v2449_v4  ;;  %v2459_v16 = vadd.f32 %v1825_v14, %v2236_v42  ;;  %v1085_v18 = vpop.f32.mrb[43].mxu0  ;;  %v2464_v23 = vsel %vm1115_vm2, %v2449_v4, -1e+30 }
 0x2da   : > { %2922 = vst [vmem:[#allocation11_spill] sm:$0xff] %v2467_v26  ;;  %v2470_v28 = vadd.f32 %v2236_v42, %v1085_v18  ;;  %v2482_v40 = vsel %vm1115_vm2, %v2467_v26, -1e+30 }
 0x2db   : > { %2921 = vst [vmem:[#allocation10_spill] sm:$0xff] %v2459_v16  ;;  %1200 = vmax.xlane.f32.xlu0 %v2464_v23  ;;  %v2476_v30 = vsel %vm1115_vm2, %v2459_v16, -1e+30 }
 0x2dc   : > { %2923 = vst [vmem:[#allocation12_spill] sm:$0xff] %v2470_v28  ;;  %1202 = vmax.xlane.f32.xlu1 %v2476_v30  ;;  %v2488_v48 = vsel %vm1115_vm2, %v2470_v28, -1e+30 }
 0x2de   : > { %v1828_v35 = vpop.f32.mrb[44].mxu0 }
 0x2df   : > { %v1098_v44 = vpop.f32.mrb[45].mxu0  ;;  %1196 = vmax.xlane.f32.xlu0 %v2482_v40  ;;  %v2495_v18 = vadd.f32 %v1828_v35, %v2236_v42 }
 0x2e0   : > { %v2491_v62 = vadd.f32 %v2236_v42, %v1098_v44  ;;  %v1829_v6 = vpop.f32.mrb[46].mxu0  ;;  %1198 = vmax.xlane.f32.xlu1 %v2488_v48 }
 0x2e1   : > { %v1101_v14 = vpop.f32.mrb[47].mxu0  ;;  %2925 = vst [vmem:[#allocation14_spill] sm:$0xff] %v2495_v18  ;;  %v2507_v44 = vadd.f32 %v1829_v6, %v2236_v42  ;;  %v2518_v35 = vsel %vm1115_vm2, %v2495_v18, -1e+30 }
 0x2e2   : > { %2924 = vst [vmem:[#allocation13_spill] sm:$0xff] %v2491_v62  ;;  %v2498_v26 = vadd.f32 %v2236_v42, %v1101_v14  ;;  %v2503_v16 = vsel %vm1115_vm2, %v2491_v62, -1e+30 }
 0x2e3   : > { %1204 = vmax.xlane.f32.xlu0 %v2503_v16  ;;  %2927 = vst [vmem:[#allocation16_spill] sm:$0xff] %v2507_v44  ;;  %v2524_v14 = vsel %vm1115_vm2, %v2507_v44, -1e+30 }
 0x2e4   : > { %2926 = vst [vmem:[#allocation15_spill] sm:$0xff] %v2498_v26  ;;  %v2512_v28 = vsel %vm1115_vm2, %v2498_v26, -1e+30 }
 0x2e5   : > { %1206 = vmax.xlane.f32.xlu1 %v2512_v28 }
 0x2e7   : > { %1208 = vmax.xlane.f32.xlu0 %v2518_v35 }
 0x2e9   : > { %1210 = vmax.xlane.f32.xlu1 %v2524_v14 }
 0x337   : > { %v1153_v42 = vpop.xlane.xlu1 %1152 }
 0x338   : > { %v1214_v6 = vsub.f32 %v2251_v49, %v1153_v42  ;;  %v1149_v26 = vpop.xlane.xlu0 %1148 }
 0x339   : > { %v1212_v62 = vsub.f32 %v2260_v51, %v1149_v26 }
 0x33a   : > { %v1248_v4 = vmul.f32 1.442695, %v1214_v6 }
 0x33b   : > { %v1244_v55 = vmul.f32 1.442695, %v1212_v62  ;;  %v1155_v54 = vpop.xlane.xlu1 %1154 }
 0x33c   : > { %1858 = vpow2.f32 %v1248_v4  ;;  %v1215_v18 = vsub.f32 %v2266_v0, %v1155_v54  ;;  %v1151_v46 = vpop.xlane.xlu0 %1150 }
 0x33d   : > { %v1213_v39 = vsub.f32 %v2272_v52, %v1151_v46  ;;  %1860 = vpow2.f32 %v1244_v55 }
 0x33e   : > { %v1250_v44 = vmul.f32 1.442695, %v1215_v18 }
 0x33f   : > { %v1246_v33 = vmul.f32 1.442695, %v1213_v39 }
 0x340   : > { %1862 = vpow2.f32 %v1250_v44  ;;  %v1161_v32 = vpop.xlane.xlu0 %1160 }
 0x341   : > { %v1218_v29 = vsub.f32 %v2284_v58, %v1161_v32  ;;  %v1163_v49 = vpop.xlane.xlu1 %1162  ;;  %1864 = vpow2.f32 %v1246_v33 }
 0x342   : > { %v1219_v51 = vsub.f32 %v2296_v61, %v1163_v49 }
 0x343   : > { %v1256_v26 = vmul.f32 1.442695, %v1218_v29 }
 0x344   : > { %v1258_v62 = vmul.f32 1.442695, %v1219_v51  ;;  %v1157_v42 = vpop.xlane.xlu0 %1156 }
 0x345   : > { %1866 = vpow2.f32 %v1256_v26  ;;  %v1216_v0 = vsub.f32 %v2302_v63, %v1157_v42  ;;  %v1159_v54 = vpop.xlane.xlu1 %1158 }
 0x346   : > { %v1859_v4 = vpop.eup %1858  ;;  %1868 = vpow2.f32 %v1258_v62  ;;  %v1217_v52 = vsub.f32 %v2311_v3, %v1159_v54 }
 0x347   : > { %v1252_v39 = vmul.f32 1.442695, %v1216_v0  ;;  %v2537_v46 = vsel %vm1115_vm2, %v1859_v4, 0.0  ;;  %v1861_v58 = vpop.eup %1860 }
 0x348   : > { %v1254_v32 = vmul.f32 1.442695, %v1217_v52  ;;  %1344 = vadd.xlane.f32.xlu0 %v2537_v46  ;;  %v1169_v61 = vpop.xlane.xlu0 %1168  ;;  %v2548_v44 = vsel %vm1115_vm2, %v1861_v58, 0.0 }
 0x349   : > { %1870 = vpow2.f32 %v1252_v39  ;;  %v1222_v29 = vsub.f32 %v2320_v7, %v1169_v61  ;;  %v1171_v33 = vpop.xlane.xlu1 %1170 }
 0x34a   : > { %v1863_v63 = vpop.eup %1862  ;;  %1872 = vpow2.f32 %v1254_v32  ;;  %v1223_v55 = vsub.f32 %v2332_v10, %v1171_v33 }
 0x34b   : > { %v1264_v18 = vmul.f32 1.442695, %v1222_v29  ;;  %v2544_v3 = vsel %vm1115_vm2, %v1863_v63, 0.0  ;;  %v1865_v6 = vpop.eup %1864 }
 0x34c   : > { %v1266_v49 = vmul.f32 1.442695, %v1223_v55  ;;  %1346 = vadd.xlane.f32.xlu1 %v2544_v3  ;;  %1340 = vadd.xlane.f32.xlu0 %v2548_v44  ;;  %v1165_v7 = vpop.xlane.xlu0 %1164  ;;  %v2556_v0 = vsel %vm1115_vm2, %v1865_v6, 0.0 }
 0x34d   : > { %1874 = vpow2.f32 %v1264_v18  ;;  %v1220_v51 = vsub.f32 %v2338_v12, %v1165_v7  ;;  %v1167_v10 = vpop.xlane.xlu1 %1166 }
 0x34e   : > { %1876 = vpow2.f32 %v1266_v49  ;;  %v1221_v26 = vsub.f32 %v2347_v15, %v1167_v10 }
 0x34f   : > { %v1867_v62 = vpop.eup %1866  ;;  %v1260_v42 = vmul.f32 1.442695, %v1220_v51 }
 0x350   : > { %v1869_v54 = vpop.eup %1868  ;;  %v1262_v4 = vmul.f32 1.442695, %v1221_v26  ;;  %1342 = vadd.xlane.f32.xlu1 %v2556_v0  ;;  %v1177_v52 = vpop.xlane.xlu0 %1176  ;;  %v2561_v39 = vsel %vm1115_vm2, %v1867_v62, 0.0 }
 0x351   : > { %1878 = vpow2.f32 %v1260_v42  ;;  %v1226_v12 = vsub.f32 %v2356_v19, %v1177_v52  ;;  %v1179_v58 = vpop.xlane.xlu1 %1178  ;;  %1352 = vadd.xlane.f32.xlu0 %v2561_v39  ;;  %v2568_v29 = vsel %vm1115_vm2, %v1869_v54, 0.0 }
 0x352   : > { %1880 = vpow2.f32 %v1262_v4  ;;  %v1227_v15 = vsub.f32 %v2368_v22, %v1179_v58 }
 0x353   : > { %v1871_v32 = vpop.eup %1870  ;;  %v1272_v61 = vmul.f32 1.442695, %v1226_v12 }
 0x354   : > { %v1873_v33 = vpop.eup %1872  ;;  %v1274_v63 = vmul.f32 1.442695, %v1227_v15  ;;  %1354 = vadd.xlane.f32.xlu1 %v2568_v29  ;;  %v1173_v55 = vpop.xlane.xlu0 %1172  ;;  %v2573_v19 = vsel %vm1115_vm2, %v1871_v32, 0.0 }
 0x355   : > { %1882 = vpow2.f32 %v1272_v61  ;;  %v1224_v18 = vsub.f32 %v2374_v24, %v1173_v55  ;;  %v1175_v6 = vpop.xlane.xlu1 %1174  ;;  %1348 = vadd.xlane.f32.xlu0 %v2573_v19  ;;  %v2580_v51 = vsel %vm1115_vm2, %v1873_v33, 0.0 }
 0x356   : > { %1884 = vpow2.f32 %v1274_v63  ;;  %v1225_v22 = vsub.f32 %v2383_v27, %v1175_v6 }
 0x357   : > { %v1875_v49 = vpop.eup %1874  ;;  %v1268_v7 = vmul.f32 1.442695, %v1224_v18 }
 0x358   : > { %v1877_v10 = vpop.eup %1876  ;;  %v1270_v26 = vmul.f32 1.442695, %v1225_v22  ;;  %1350 = vadd.xlane.f32.xlu1 %v2580_v51  ;;  %v1185_v62 = vpop.xlane.xlu0 %1184  ;;  %v2585_v24 = vsel %vm1115_vm2, %v1875_v49, 0.0 }
 0x359   : > { %1886 = vpow2.f32 %v1268_v7  ;;  %v1230_v42 = vsub.f32 %v2392_v31, %v1185_v62  ;;  %v1187_v54 = vpop.xlane.xlu1 %1186  ;;  %1360 = vadd.xlane.f32.xlu0 %v2585_v24  ;;  %v2592_v12 = vsel %vm1115_vm2, %v1877_v10, 0.0 }
 0x35a   : > { %1888 = vpow2.f32 %v1270_v26  ;;  %v1231_v27 = vsub.f32 %v2404_v34, %v1187_v54 }
 0x35b   : > { %v1879_v4 = vpop.eup %1878  ;;  %v1280_v52 = vmul.f32 1.442695, %v1230_v42 }
 0x35c   : > { %v1881_v58 = vpop.eup %1880  ;;  %v1282_v15 = vmul.f32 1.442695, %v1231_v27  ;;  %1362 = vadd.xlane.f32.xlu1 %v2592_v12  ;;  %v1181_v32 = vpop.xlane.xlu0 %1180  ;;  %v2597_v31 = vsel %vm1115_vm2, %v1879_v4, 0.0 }
 0x35d   : > { %1890 = vpow2.f32 %v1280_v52  ;;  %v1228_v61 = vsub.f32 %v2410_v37, %v1181_v32  ;;  %v1183_v33 = vpop.xlane.xlu1 %1182  ;;  %1356 = vadd.xlane.f32.xlu0 %v2597_v31  ;;  %v2604_v18 = vsel %vm1115_vm2, %v1881_v58, 0.0 }
 0x35e   : > { %1892 = vpow2.f32 %v1282_v15  ;;  %v1229_v34 = vsub.f32 %v2419_v43, %v1183_v33 }
 0x35f   : > { %v1883_v63 = vpop.eup %1882  ;;  %v1276_v55 = vmul.f32 1.442695, %v1228_v61 }
 0x360   : > { %v1885_v6 = vpop.eup %1884  ;;  %v1278_v22 = vmul.f32 1.442695, %v1229_v34  ;;  %1358 = vadd.xlane.f32.xlu1 %v2604_v18  ;;  %v1193_v49 = vpop.xlane.xlu0 %1192  ;;  %v2609_v37 = vsel %vm1115_vm2, %v1883_v63, 0.0 }
 0x361   : > { %1894 = vpow2.f32 %v1276_v55  ;;  %v1234_v7 = vsub.f32 %v2428_v38, %v1193_v49  ;;  %v1195_v10 = vpop.xlane.xlu1 %1194  ;;  %1368 = vadd.xlane.f32.xlu0 %v2609_v37  ;;  %v2616_v42 = vsel %vm1115_vm2, %v1885_v6, 0.0 }
 0x362   : > { %1896 = vpow2.f32 %v1278_v22  ;;  %v1235_v43 = vsub.f32 %v2440_v57, %v1195_v10 }
 0x363   : > { %v1887_v26 = vpop.eup %1886  ;;  %v1288_v62 = vmul.f32 1.442695, %v1234_v7 }
 0x364   : > { %v1889_v54 = vpop.eup %1888  ;;  %v1290_v27 = vmul.f32 1.442695, %v1235_v43  ;;  %1370 = vadd.xlane.f32.xlu1 %v2616_v42  ;;  %v1189_v4 = vpop.xlane.xlu0 %1188  ;;  %v2621_v38 = vsel %vm1115_vm2, %v1887_v26, 0.0 }
 0x365   : > { %1898 = vpow2.f32 %v1288_v62  ;;  %v1232_v52 = vsub.f32 %v2446_v2, %v1189_v4  ;;  %v1191_v58 = vpop.xlane.xlu1 %1190  ;;  %1364 = vadd.xlane.f32.xlu0 %v2621_v38  ;;  %v2628_v61 = vsel %vm1115_vm2, %v1889_v54, 0.0 }
 0x366   : > { %1900 = vpow2.f32 %v1290_v27  ;;  %v1233_v57 = vsub.f32 %v2455_v11, %v1191_v58 }
 0x367   : > { %v1891_v15 = vpop.eup %1890  ;;  %v1284_v32 = vmul.f32 1.442695, %v1232_v52 }
 0x368   : > { %v1893_v33 = vpop.eup %1892  ;;  %v1286_v34 = vmul.f32 1.442695, %v1233_v57  ;;  %1366 = vadd.xlane.f32.xlu1 %v2628_v61  ;;  %v1201_v63 = vpop.xlane.xlu0 %1200  ;;  %v2633_v2 = vsel %vm1115_vm2, %v1891_v15, 0.0 }
 0x369   : > { %1902 = vpow2.f32 %v1284_v32  ;;  %v1238_v55 = vsub.f32 %v2464_v23, %v1201_v63  ;;  %v1203_v6 = vpop.xlane.xlu1 %1202  ;;  %1376 = vadd.xlane.f32.xlu0 %v2633_v2  ;;  %v2640_v7 = vsel %vm1115_vm2, %v1893_v33, 0.0 }
 0x36a   : > { %1904 = vpow2.f32 %v1286_v34  ;;  %v1239_v11 = vsub.f32 %v2476_v30, %v1203_v6 }
 0x36b   : > { %v1895_v22 = vpop.eup %1894  ;;  %v1296_v49 = vmul.f32 1.442695, %v1238_v55 }
 0x36c   : > { %v1897_v10 = vpop.eup %1896  ;;  %v1298_v43 = vmul.f32 1.442695, %v1239_v11  ;;  %1378 = vadd.xlane.f32.xlu1 %v2640_v7  ;;  %v1197_v26 = vpop.xlane.xlu0 %1196  ;;  %v2645_v23 = vsel %vm1115_vm2, %v1895_v22, 0.0 }
 0x36d   : > { %1906 = vpow2.f32 %v1296_v49  ;;  %v1236_v62 = vsub.f32 %v2482_v40, %v1197_v26  ;;  %v1199_v54 = vpop.xlane.xlu1 %1198  ;;  %1372 = vadd.xlane.f32.xlu0 %v2645_v23  ;;  %v2652_v52 = vsel %vm1115_vm2, %v1897_v10, 0.0 }
 0x36e   : > { %1908 = vpow2.f32 %v1298_v43  ;;  %v1237_v30 = vsub.f32 %v2488_v48, %v1199_v54 }
 0x36f   : > { %v1899_v27 = vpop.eup %1898  ;;  %v1292_v4 = vmul.f32 1.442695, %v1236_v62 }
 0x370   : > { %v1901_v58 = vpop.eup %1900  ;;  %v1294_v57 = vmul.f32 1.442695, %v1237_v30  ;;  %1374 = vadd.xlane.f32.xlu1 %v2652_v52  ;;  %v1205_v15 = vpop.xlane.xlu0 %1204  ;;  %v2657_v40 = vsel %vm1115_vm2, %v1899_v27, 0.0 }
 0x371   : > { %1910 = vpow2.f32 %v1292_v4  ;;  %v1240_v32 = vsub.f32 %v2503_v16, %v1205_v15  ;;  %1384 = vadd.xlane.f32.xlu0 %v2657_v40  ;;  %v2664_v55 = vsel %vm1115_vm2, %v1901_v58, 0.0 }
 0x372   : > { %1912 = vpow2.f32 %v1294_v57  ;;  %v1207_v48 = vpop.xlane.xlu1 %1206 }
 0x373   : > { %v1903_v33 = vpop.eup %1902  ;;  %v1300_v34 = vmul.f32 1.442695, %v1240_v32  ;;  %v1241_v63 = vsub.f32 %v2512_v28, %v1207_v48 }
 0x374   : > { %v1905_v6 = vpop.eup %1904  ;;  %1386 = vadd.xlane.f32.xlu1 %v2664_v55  ;;  %v1209_v11 = vpop.xlane.xlu0 %1208  ;;  %v2669_v22 = vsel %vm1115_vm2, %v1903_v33, 0.0 }
 0x375   : > { %1914 = vpow2.f32 %v1300_v34  ;;  %v1302_v16 = vmul.f32 1.442695, %v1241_v63  ;;  %v1242_v49 = vsub.f32 %v2518_v35, %v1209_v11  ;;  %1380 = vadd.xlane.f32.xlu0 %v2669_v22  ;;  %v2676_v62 = vsel %vm1115_vm2, %v1905_v6, 0.0 }
 0x376   : > { %v1211_v10 = vpop.xlane.xlu1 %1210 }
 0x377   : > { %v1907_v28 = vpop.eup %1906  ;;  %1916 = vpow2.f32 %v1302_v16  ;;  %v1304_v43 = vmul.f32 1.442695, %v1242_v49  ;;  %v1243_v26 = vsub.f32 %v2524_v14, %v1211_v10 }
 0x378   : > { %v1909_v54 = vpop.eup %1908  ;;  %1382 = vadd.xlane.f32.xlu1 %v2676_v62  ;;  %v2681_v30 = vsel %vm1115_vm2, %v1907_v28, 0.0 }
 0x379   : > { %1918 = vpow2.f32 %v1304_v43  ;;  %v1306_v35 = vmul.f32 1.442695, %v1243_v26  ;;  %1392 = vadd.xlane.f32.xlu0 %v2681_v30  ;;  %v2686_v14 = vsel %vm1115_vm2, %v1909_v54, 0.0 }
 0x37b   : > { %v1911_v27 = vpop.eup %1910  ;;  %1920 = vpow2.f32 %v1306_v35 }
 0x37c   : > { %v1913_v4 = vpop.eup %1912  ;;  %1394 = vadd.xlane.f32.xlu1 %v2686_v14  ;;  %v2691_v58 = vsel %vm1115_vm2, %v1911_v27, 0.0 }
 0x37d   : > { %1388 = vadd.xlane.f32.xlu0 %v2691_v58  ;;  %v2696_v15 = vsel %vm1115_vm2, %v1913_v4, 0.0 }
 0x37f   : > { %v1915_v57 = vpop.eup %1914 }
 0x380   : > { %1390 = vadd.xlane.f32.xlu1 %v2696_v15  ;;  %v2701_v32 = vsel %vm1115_vm2, %v1915_v57, 0.0 }
 0x381   : > { %v1917_v48 = vpop.eup %1916  ;;  %1396 = vadd.xlane.f32.xlu0 %v2701_v32 }
 0x382   : > { %v2706_v33 = vsel %vm1115_vm2, %v1917_v48, 0.0 }
 0x383   : > { %v1919_v34 = vpop.eup %1918 }
 0x384   : > { %1398 = vadd.xlane.f32.xlu1 %v2706_v33  ;;  %v2711_v63 = vsel %vm1115_vm2, %v1919_v34, 0.0 }
 0x385   : > { %v1921_v6 = vpop.eup %1920  ;;  %1400 = vadd.xlane.f32.xlu0 %v2711_v63 }
 0x386   : > { %v2716_v11 = vsel %vm1115_vm2, %v1921_v6, 0.0 }
 0x388   : > { %1402 = vadd.xlane.f32.xlu1 %v2716_v11 }
 0x3d5   : > { %v1345_v16 = vpop.xlane.xlu0 %1344 }
 0x3d6   : > { %1922 = vrcp.f32 %v1345_v16 }
 0x3d9   : > { %v1347_v49 = vpop.xlane.xlu1 %1346  ;;  %v1341_v10 = vpop.xlane.xlu0 %1340 }
 0x3da   : > { %1924 = vrcp.f32 %v1347_v49 }
 0x3db   : > { %1926 = vrcp.f32 %v1341_v10 }
 0x3dd   : > { %v1343_v28 = vpop.xlane.xlu1 %1342 }
 0x3de   : > { %1928 = vrcp.f32 %v1343_v28  ;;  %v1353_v43 = vpop.xlane.xlu0 %1352 }
 0x3df   : > { %1930 = vrcp.f32 %v1353_v43 }
 0x3e0   : > { %v1923_v26 = vpop.eup %1922 }
 0x3e1   : > { %v1438_v54 = vmul.f32 %v1923_v26, %v2537_v46  ;;  %v1355_v35 = vpop.xlane.xlu1 %1354 }
 0x3e2   : > { %1932 = vrcp.f32 %v1355_v35  ;;  %v1349_v27 = vpop.xlane.xlu0 %1348 }
 0x3e3   : > { %v1471_v4 = vsel %vm1468_vm3, %v2240_v36, %v1438_v54  ;;  %1934 = vrcp.f32 %v1349_v27 }
 0x3e4   : > { %v1925_v57 = vpop.eup %1924  ;;  %1503 = vst [vmem:[%s2725_s10 + $0x10] sm:$0xff] %v1471_v4 }
 0x3e5   : > { %v1927_v48 = vpop.eup %1926  ;;  %v1439_v34 = vmul.f32 %v1925_v57, %v2544_v3  ;;  %v1351_v6 = vpop.xlane.xlu1 %1350 }
 0x3e6   : > { %v1436_v16 = vmul.f32 %v1927_v48, %v2548_v44  ;;  %1936 = vrcp.f32 %v1351_v6  ;;  %v1361_v46 = vpop.xlane.xlu0 %1360 }
 0x3e7   : > { %v1472_v49 = vsel %vm1468_vm3, %v2246_v47, %v1439_v34  ;;  %1938 = vrcp.f32 %v1361_v46 }
 0x3e8   : > { %v1929_v10 = vpop.eup %1928  ;;  %1504 = vst [vmem:[%s2725_s10 + $0x18] sm:$0xff] %v1472_v49  ;;  %v1469_v36 = vsel %vm1468_vm3, %v2243_v45, %v1436_v16 }
 0x3e9   : > { %v1931_v28 = vpop.eup %1930  ;;  %1501 = vst [vmem:[%s2725_s10] sm:$0xff] %v1469_v36  ;;  %v1437_v3 = vmul.f32 %v1929_v10, %v2556_v0  ;;  %v1363_v44 = vpop.xlane.xlu1 %1362 }
 0x3ea   : > { %v1442_v43 = vmul.f32 %v1931_v28, %v2561_v39  ;;  %1940 = vrcp.f32 %v1363_v44  ;;  %v1357_v26 = vpop.xlane.xlu0 %1356 }
 0x3eb   : > { %v1470_v47 = vsel %vm1468_vm3, %v2254_v50, %v1437_v3  ;;  %1942 = vrcp.f32 %v1357_v26 }
 0x3ec   : > { %v1933_v54 = vpop.eup %1932  ;;  %1502 = vst [vmem:[%s2725_s10 + $0x8] sm:$0xff] %v1470_v47  ;;  %v1475_v45 = vsel %vm1468_vm3, %v2275_v53, %v1442_v43 }
 0x3ed   : > { %v1935_v35 = vpop.eup %1934  ;;  %1507 = vst [vmem:[%s2725_s10 + $0x30] sm:$0xff] %v1475_v45  ;;  %v1443_v0 = vmul.f32 %v1933_v54, %v2568_v29  ;;  %v1359_v39 = vpop.xlane.xlu1 %1358 }
 0x3ee   : > { %v1440_v27 = vmul.f32 %v1935_v35, %v2573_v19  ;;  %1944 = vrcp.f32 %v1359_v39  ;;  %v1369_v4 = vpop.xlane.xlu0 %1368 }
 0x3ef   : > { %v1476_v50 = vsel %vm1468_vm3, %v2279_v56, %v1443_v0  ;;  %1946 = vrcp.f32 %v1369_v4 }
 0x3f0   : > { %v1937_v57 = vpop.eup %1936  ;;  %1508 = vst [vmem:[%s2725_s10 + $0x38] sm:$0xff] %v1476_v50  ;;  %v1473_v53 = vsel %vm1468_vm3, %v2287_v59, %v1440_v27 }
 0x3f1   : > { %v1939_v48 = vpop.eup %1938  ;;  %1505 = vst [vmem:[%s2725_s10 + $0x20] sm:$0xff] %v1473_v53  ;;  %v1441_v29 = vmul.f32 %v1937_v57, %v2580_v51  ;;  %v1371_v19 = vpop.xlane.xlu1 %1370  ;;  %v2928_v53 = vld [vmem:[#allocation2_spill] sm:$0xff] }
 0x3f2   : > { %v1446_v34 = vmul.f32 %v1939_v48, %v2585_v24  ;;  %1948 = vrcp.f32 %v1371_v19  ;;  %v1365_v6 = vpop.xlane.xlu0 %1364 }
 0x3f3   : > { %v1474_v56 = vsel %vm1468_vm3, %v2290_v60, %v1441_v29  ;;  %1950 = vrcp.f32 %v1365_v6  ;;  %v2929_v29 = vld [vmem:[#allocation3_spill] sm:$0xff] }
 0x3f4   : > { %v1941_v16 = vpop.eup %1940  ;;  %1506 = vst [vmem:[%s2725_s10 + $0x28] sm:$0xff] %v1474_v56  ;;  %v1479_v59 = vsel %vm1468_vm3, %v2305_v1, %v1446_v34  ;;  %v2930_v56 = vld [vmem:[#allocation4_spill] sm:$0xff] }
 0x3f5   : > { %v1943_v46 = vpop.eup %1942  ;;  %1511 = vst [vmem:[%s2725_s10 + $0x50] sm:$0xff] %v1479_v59  ;;  %v1447_v51 = vmul.f32 %v1941_v16, %v2592_v12  ;;  %v1367_v24 = vpop.xlane.xlu1 %1366 }
 0x3f6   : > { %v1444_v49 = vmul.f32 %v1943_v46, %v2597_v31  ;;  %1952 = vrcp.f32 %v1367_v24  ;;  %v1377_v10 = vpop.xlane.xlu0 %1376  ;;  %v2931_v46 = vld [vmem:[#allocation5_spill] sm:$0xff] }
 0x3f7   : > { %v1480_v60 = vsel %vm1468_vm3, %v2315_v5, %v1447_v51  ;;  %1954 = vrcp.f32 %v1377_v10 }
 0x3f8   : > { %v1945_v36 = vpop.eup %1944  ;;  %1512 = vst [vmem:[%s2725_s10 + $0x58] sm:$0xff] %v1480_v60  ;;  %v1477_v1 = vsel %vm1468_vm3, %v2323_v8, %v1444_v49  ;;  %v2932_v60 = vld [vmem:[#allocation6_spill] sm:$0xff] }
 0x3f9   : > { %v1947_v28 = vpop.eup %1946  ;;  %1509 = vst [vmem:[%s2725_s10 + $0x40] sm:$0xff] %v1477_v1  ;;  %v1445_v12 = vmul.f32 %v1945_v36, %v2604_v18  ;;  %v1379_v31 = vpop.xlane.xlu1 %1378 }
 0x3fa   : > { %v1450_v3 = vmul.f32 %v1947_v28, %v2609_v37  ;;  %1956 = vrcp.f32 %v1379_v31  ;;  %v1373_v44 = vpop.xlane.xlu0 %1372  ;;  %v2933_v28 = vld [vmem:[#allocation7_spill] sm:$0xff] }
 0x3fb   : > { %v1478_v5 = vsel %vm1468_vm3, %v2326_v9, %v1445_v12  ;;  %1958 = vrcp.f32 %v1373_v44 }
 0x3fc   : > { %v1949_v43 = vpop.eup %1948  ;;  %1510 = vst [vmem:[%s2725_s10 + $0x48] sm:$0xff] %v1478_v5  ;;  %v1483_v8 = vsel %vm1468_vm3, %v2341_v13, %v1450_v3  ;;  %v2934_v5 = vld [vmem:[#allocation8_spill] sm:$0xff] }
 0x3fd   : > { %v1951_v26 = vpop.eup %1950  ;;  %1515 = vst [vmem:[%s2725_s10 + $0x70] sm:$0xff] %v1483_v8  ;;  %v1451_v18 = vmul.f32 %v1949_v43, %v2616_v42  ;;  %v1375_v37 = vpop.xlane.xlu1 %1374 }
 0x3fe   : > { %v1448_v47 = vmul.f32 %v1951_v26, %v2621_v38  ;;  %1960 = vrcp.f32 %v1375_v37  ;;  %v1385_v54 = vpop.xlane.xlu0 %1384  ;;  %v2935_v26 = vld [vmem:[#allocation9_spill] sm:$0xff] }
 0x3ff   : > { %v1484_v9 = vsel %vm1468_vm3, %v2351_v17, %v1451_v18  ;;  %1962 = vrcp.f32 %v1385_v54  ;;  %v2936_v54 = vld [vmem:[#allocation10_spill] sm:$0xff] }
 0x400   : > { %v1953_v45 = vpop.eup %1952  ;;  %1516 = vst [vmem:[%s2725_s10 + $0x78] sm:$0xff] %v1484_v9  ;;  %v1481_v13 = vsel %vm1468_vm3, %v2359_v20, %v1448_v47 }
 0x401   : > { %v1955_v35 = vpop.eup %1954  ;;  %1513 = vst [vmem:[%s2725_s10 + $0x60] sm:$0xff] %v1481_v13  ;;  %v1449_v42 = vmul.f32 %v1953_v45, %v2628_v61  ;;  %v1387_v38 = vpop.xlane.xlu1 %1386  ;;  %v2937_v13 = vld [vmem:[#allocation11_spill] sm:$0xff] }
 0x402   : > { %v1454_v0 = vmul.f32 %v1955_v35, %v2633_v2  ;;  %1964 = vrcp.f32 %v1387_v38  ;;  %v1381_v39 = vpop.xlane.xlu0 %1380 }
 0x403   : > { %v1482_v17 = vsel %vm1468_vm3, %v2362_v21, %v1449_v42  ;;  %1966 = vrcp.f32 %v1381_v39 }
 0x404   : > { %v1957_v27 = vpop.eup %1956  ;;  %1514 = vst [vmem:[%s2725_s10 + $0x68] sm:$0xff] %v1482_v17  ;;  %v1487_v20 = vsel %vm1468_vm3, %v2377_v25, %v1454_v0  ;;  %v2939_v17 = vld [vmem:[#allocation13_spill] sm:$0xff] }
 0x405   : > { %v1959_v4 = vpop.eup %1958  ;;  %1519 = vst [vmem:[%s2725_s10 + $0x90] sm:$0xff] %v1487_v20  ;;  %v1455_v61 = vmul.f32 %v1957_v27, %v2640_v7  ;;  %v1383_v2 = vpop.xlane.xlu1 %1382 }
 0x406   : > { %v1452_v50 = vmul.f32 %v1959_v4, %v2645_v23  ;;  %1968 = vrcp.f32 %v1383_v2  ;;  %v1393_v57 = vpop.xlane.xlu0 %1392 }
 0x407   : > { %v1488_v21 = vsel %vm1468_vm3, %v2928_v53, %v1455_v61  ;;  %1970 = vrcp.f32 %v1393_v57 }
 0x408   : > { %v1961_v48 = vpop.eup %1960  ;;  %1520 = vst [vmem:[%s2725_s10 + $0x98] sm:$0xff] %v1488_v21  ;;  %v1485_v25 = vsel %vm1468_vm3, %v2929_v29, %v1452_v50  ;;  %v2941_v50 = vld [vmem:[#allocation14_spill] sm:$0xff]  ;;  %v2942_v21 = vld [vmem:[#allocation16_spill] sm:$0xff] }
 0x409   : > { %v1963_v19 = vpop.eup %1962  ;;  %1517 = vst [vmem:[%s2725_s10 + $0x80] sm:$0xff] %v1485_v25  ;;  %v1453_v7 = vmul.f32 %v1961_v48, %v2652_v52  ;;  %v1395_v23 = vpop.xlane.xlu1 %1394 }
 0x40a   : > { %v1458_v34 = vmul.f32 %v1963_v19, %v2657_v40  ;;  %1972 = vrcp.f32 %v1395_v23  ;;  %v1389_v6 = vpop.xlane.xlu0 %1388 }
 0x40b   : > { %v1486_v16 = vsel %vm1468_vm3, %v2930_v56, %v1453_v7  ;;  %1974 = vrcp.f32 %v1389_v6 }
 0x40c   : > { %v1965_v59 = vpop.eup %1964  ;;  %1518 = vst [vmem:[%s2725_s10 + $0x88] sm:$0xff] %v1486_v16  ;;  %v1491_v51 = vsel %vm1468_vm3, %v2931_v46, %v1458_v34 }
 0x40d   : > { %v1967_v24 = vpop.eup %1966  ;;  %1523 = vst [vmem:[%s2725_s10 + $0xb0] sm:$0xff] %v1491_v51  ;;  %v1459_v52 = vmul.f32 %v1965_v59, %v2664_v55  ;;  %v1391_v40 = vpop.xlane.xlu1 %1390 }
 0x40e   : > { %v1456_v49 = vmul.f32 %v1967_v24, %v2669_v22  ;;  %1976 = vrcp.f32 %v1391_v40  ;;  %v1397_v10 = vpop.xlane.xlu0 %1396 }
 0x40f   : > { %v1492_v36 = vsel %vm1468_vm3, %v2932_v60, %v1459_v52  ;;  %1978 = vrcp.f32 %v1397_v10 }
 0x410   : > { %v1969_v1 = vpop.eup %1968  ;;  %1524 = vst [vmem:[%s2725_s10 + $0xb8] sm:$0xff] %v1492_v36  ;;  %v1489_v12 = vsel %vm1468_vm3, %v2933_v28, %v1456_v49 }
 0x411   : > { %v1971_v31 = vpop.eup %1970  ;;  %1521 = vst [vmem:[%s2725_s10 + $0xa0] sm:$0xff] %v1489_v12  ;;  %v1457_v55 = vmul.f32 %v1969_v1, %v2676_v62  ;;  %v1399_v22 = vpop.xlane.xlu1 %1398 }
 0x412   : > { %v1462_v3 = vmul.f32 %v1971_v31, %v2681_v30  ;;  %1980 = vrcp.f32 %v1399_v22  ;;  %v1401_v44 = vpop.xlane.xlu0 %1400 }
 0x413   : > { %v1490_v43 = vsel %vm1468_vm3, %v2934_v5, %v1457_v55  ;;  %1982 = vrcp.f32 %v1401_v44 }
 0x414   : > { %v1973_v8 = vpop.eup %1972  ;;  %1522 = vst [vmem:[%s2725_s10 + $0xa8] sm:$0xff] %v1490_v43  ;;  %v1495_v18 = vsel %vm1468_vm3, %v2935_v26, %v1462_v3 }
 0x415   : > { %v1975_v37 = vpop.eup %1974  ;;  %1527 = vst [vmem:[%s2725_s10 + $0xd0] sm:$0xff] %v1495_v18  ;;  %v1463_v62 = vmul.f32 %v1973_v8, %v2686_v14  ;;  %v1403_v30 = vpop.xlane.xlu1 %1402 }
 0x416   : > { %v1460_v47 = vmul.f32 %v1975_v37, %v2691_v58  ;;  %1984 = vrcp.f32 %v1403_v30  ;;  %v2938_v58 = vld [vmem:[#allocation12_spill] sm:$0xff] }
 0x417   : > { %v1496_v9 = vsel %vm1468_vm3, %v2936_v54, %v1463_v62 }
 0x418   : > { %v1977_v45 = vpop.eup %1976  ;;  %1528 = vst [vmem:[%s2725_s10 + $0xd8] sm:$0xff] %v1496_v9  ;;  %v1493_v35 = vsel %vm1468_vm3, %v2937_v13, %v1460_v47 }
 0x419   : > { %v1979_v42 = vpop.eup %1978  ;;  %1525 = vst [vmem:[%s2725_s10 + $0xc0] sm:$0xff] %v1493_v35  ;;  %v1461_v14 = vmul.f32 %v1977_v45, %v2696_v15  ;;  %v2940_v15 = vld [vmem:[#allocation15_spill] sm:$0xff] }
 0x41a   : > { %v1464_v38 = vmul.f32 %v1979_v42, %v2701_v32 }
 0x41b   : > { %v1494_v0 = vsel %vm1468_vm3, %v2938_v58, %v1461_v14 }
 0x41c   : > { %v1981_v39 = vpop.eup %1980  ;;  %1526 = vst [vmem:[%s2725_s10 + $0xc8] sm:$0xff] %v1494_v0  ;;  %v1497_v27 = vsel %vm1468_vm3, %v2939_v17, %v1464_v38 }
 0x41d   : > { %v1983_v20 = vpop.eup %1982  ;;  %1529 = vst [vmem:[%s2725_s10 + $0xe0] sm:$0xff] %v1497_v27  ;;  %v1465_v4 = vmul.f32 %v1981_v39, %v2706_v33 }
 0x41e   : > { %v1466_v61 = vmul.f32 %v1983_v20, %v2711_v63 }
 0x41f   : > { %v1498_v32 = vsel %vm1468_vm3, %v2940_v15, %v1465_v4 }
 0x420   : > { %v1985_v2 = vpop.eup %1984  ;;  %1530 = vst [vmem:[%s2725_s10 + $0xe8] sm:$0xff] %v1498_v32  ;;  %v1499_v57 = vsel %vm1468_vm3, %v2941_v50, %v1466_v61 }
 0x421   : > { %1531 = vst [vmem:[%s2725_s10 + $0xf0] sm:$0xff] %v1499_v57  ;;  %v1467_v53 = vmul.f32 %v1985_v2, %v2716_v11 }
 0x423   : > { %v1500_v48 = vsel %vm1468_vm3, %v2942_v21, %v1467_v53 }
 0x424   : > { %1532 = vst [vmem:[%s2725_s10 + $0xf8] sm:$0xff] %v1500_v48 }
 0x425 PF: > { %s17_s24 = sadd.s32 1, %s1992_s24  }
 0x426   : > { %p14_p4 = scmp.ge.s32.totalorder %s17_s24, 4  }
 0x428   :  { %16 = sbr.rel (!%p14_p4) target bundleno = 1 (0x1), region = 78 }

</bundles_post_ra>
